<compile_context>
chip_gen: v7x
topology: tpu7x:2x2x1
jax: 0.10.0
libtpu: 0.0.40
codegen_flags: <defaults>
</compile_context>

<pallas_src>
import numpy as np
import jax
import jax.numpy as jnp
from jax.experimental import pallas as pl
from jax.experimental.pallas import tpu as pltpu


TB = 32  # samples per grid step -> conv matmul M = 8*TB = 256


# ----------------------------- fused Pallas kernel ---------------------------

def _encoder_kernel(a_ref, b_ref, c_ref, d_ref,
                    w1_ref, b1_ref, w2_ref, b2_ref,
                    wfc1_ref, bfc1_ref, wfc2_ref, bfc2_ref,
                    o_ref):
    """One block of TB samples per grid step; everything stays in VMEM/vregs.

    Row layout of every (8*TB, .) activation inside the block: row = h*TB + n
    (h = spatial row index, n = sample-in-block), so conv2's stride-2 row
    shift and fc1's per-h2 slabs are contiguous, aligned slices.
    """
    f32, bf16 = jnp.float32, jnp.bfloat16
    tb8 = a_ref.shape[0]
    tb = tb8 // 8

    a = a_ref[...]          # padded even rows 0..14   (8TB, 72) bf16
    b = b_ref[...]          # padded odd  rows 1..15
    c = c_ref[...]          # padded even rows 2..16
    d = d_ref[...]          # padded odd  rows 3..17

    # ---------------- conv1: 3x3, stride 1, pad 1, tanh ----------------------
    # Column taps folded into W1_i (72, 128); 3 matmuls per row parity.
    w10, w11, w12 = w1_ref[0], w1_ref[1], w1_ref[2]
    acc_e = (jnp.dot(a, w10, preferred_element_type=f32)
             + jnp.dot(b, w11, preferred_element_type=f32)
             + jnp.dot(c, w12, preferred_element_type=f32))
    acc_o = (jnp.dot(b, w10, preferred_element_type=f32)
             + jnp.dot(c, w11, preferred_element_type=f32)
             + jnp.dot(d, w12, preferred_element_type=f32))
    out1_e = jnp.tanh(acc_e + b1_ref[...]).astype(bf16)   # conv1 rows 0,2,..,14
    out1_o = jnp.tanh(acc_o + b1_ref[...]).astype(bf16)   # conv1 rows 1,3,..,15
    # Lane-dense layout: column = w*8 + c_out (128 lanes), row = h*TB + n.

    # ---------------- conv2: 3x3, stride 2, pad 1, tanh ----------------------
    # Stride-2 columns + j taps folded/pre-summed into W2c_i (128, 64).
    # Row tap i=0 needs conv1 row 2*h2-1 (odd rows shifted down one h2, zero
    # for h2==0): shift the matmul result by TB rows with one aligned concat.
    n2 = w2_ref.shape[-1]
    p0 = jnp.dot(out1_o[: tb8 - tb, :], w2_ref[0], preferred_element_type=f32)
    p0 = jnp.concatenate([jnp.zeros((tb, n2), f32), p0], axis=0)
    acc2 = (p0
            + jnp.dot(out1_e, w2_ref[1], preferred_element_type=f32)
            + jnp.dot(out1_o, w2_ref[2], preferred_element_type=f32))
    out2 = jnp.tanh(acc2 + b2_ref[...]).astype(bf16)       # (8TB, 64): w2*8+c

    # ---------------- fc1 (512->32) + tanh -----------------------------------
    # Torch flat index c*64 + h2*8 + w2 -> wfc1[h2] is (64, 32); the h2 slabs
    # are contiguous row ranges, so fc1 is 8 accumulating (TB,64)@(64,32).
    acc3 = bfc1_ref[...]
    for h2 in range(8):
        acc3 = acc3 + jnp.dot(out2[h2 * tb:(h2 + 1) * tb, :], wfc1_ref[h2],
                              preferred_element_type=f32)
    z = jnp.tanh(acc3).astype(bf16)                         # (TB, 32)

    # ---------------- fc2 (32->2), lane-dense store ---------------------------
    y = jnp.dot(z, wfc2_ref[...], preferred_element_type=f32) + bfc2_ref[...]
    o_ref[...] = y.astype(o_ref.dtype)                      # (TB, 128), cols 0:2 real


# --------------------------- parameter preprocessing --------------------------

def preprocess_params(p):
    """One-time host-side reshape of PyTorch-layout params into kernel slabs."""
    f32 = np.float32
    conv1_w = np.asarray(p["conv1_w"], f32)   # (8, 4, 3, 3) OIHW
    conv1_b = np.asarray(p["conv1_b"], f32)
    conv2_w = np.asarray(p["conv2_w"], f32)   # (8, 8, 3, 3)
    conv2_b = np.asarray(p["conv2_b"], f32)
    fc1_w = np.asarray(p["fc1_w"], f32)       # (32, 512)
    fc1_b = np.asarray(p["fc1_b"], f32)
    fc2_w = np.asarray(p["fc2_w"], f32)       # (2, 32)
    fc2_b = np.asarray(p["fc2_b"], f32)

    # conv1 row-tap i, column taps folded:
    #   W1[i][(w + j)*4 + ci, w*8 + co] = conv1_w[co, ci, i, j]
    w1 = np.zeros((3, 72, 128), f32)
    for i in range(3):
        for j in range(3):
            wt = conv1_w[:, :, i, j].T                    # (ci, co)
            for w in range(16):
                win = w + j                                # padded input column
                w1[i, win * 4:(win + 1) * 4, w * 8:(w + 1) * 8] += wt
    b1t = np.tile(conv1_b, 16).reshape(1, 128)

    # conv2 row-tap i, column taps + stride-2 selection folded and pre-summed:
    #   W2c[i][w1*8 + ci, w2*8 + co] = conv2_w[co, ci, i, j] iff w1 == 2*w2+j-1
    w2c = np.zeros((3, 128, 64), f32)
    for i in range(3):
        for j in range(3):
            wt = conv2_w[:, :, i, j].T                    # (ci, co)
            for w2 in range(8):
                w1c = 2 * w2 + j - 1
                if 0 <= w1c < 16:
                    w2c[i, w1c * 8:(w1c + 1) * 8, w2 * 8:(w2 + 1) * 8] += wt
    b2t = np.tile(conv2_b, 8).reshape(1, 64)

    # fc1: torch flat index = c*64 + h2*8 + w2  ->  (h2, w2*8 + c, out)
    wfc1 = (fc1_w.reshape(32, 8, 8, 8)                     # (o, c, h2, w2)
            .transpose(2, 3, 1, 0).reshape(8, 64, 32))
    bfc1 = fc1_b.reshape(1, 32)

    # fc2: zero-pad to 128 output lanes for an unmasked lane-dense store.
    wfc2p = np.zeros((32, 128), f32)
    wfc2p[:, :2] = fc2_w.T
    bfc2p = np.zeros((1, 128), f32)
    bfc2p[0, :2] = fc2_b

    bf16 = jnp.bfloat16
    return dict(
        w1=jnp.asarray(w1, bf16), b1=jnp.asarray(b1t),
        w2=jnp.asarray(w2c, bf16), b2=jnp.asarray(b2t),
        wfc1=jnp.asarray(wfc1, bf16), bfc1=jnp.asarray(bfc1),
        wfc2=jnp.asarray(wfc2p, bf16), bfc2=jnp.asarray(bfc2p),
    )


# --------------------------------- forward ------------------------------------

@jax.jit
def encoder_forward(prep, x):
    """Matches Encoder.forward: x = convs(x.float()); x = x.view(N,-1); x = fc(x)."""
    n, ci, h, w = x.shape
    assert (ci, h, w) == (4, 16, 16), (ci, h, w)
    g = -(-n // TB)                 # number of grid steps (batch blocks)
    npad = g * TB                   # batch padded to a multiple of TB

    # Cheap one-shot input prep: NCHW -> padded NHWC, flatten each row to
    # (w*4 + c), split rows by parity, and pre-shift so the kernel only ever
    # does full-slab matmuls (no in-kernel slicing/reshaping of inputs).
    xf = jnp.transpose(x.astype(jnp.float32), (0, 2, 3, 1))      # (n,16,16,4)
    xf = jnp.pad(xf, ((0, npad - n), (1, 1), (1, 1), (0, 0)))    # (npad,18,18,4)
    xf = xf.reshape(npad, 18, 72)                                # rows=h, cols=w*4+c
    x_even = xf[:, 0::2, :]                                      # padded rows 0,2,..,16
    x_odd = xf[:, 1::2, :]                                       # padded rows 1,3,..,17

    def slab(s):
        # (npad, 8, 72) -> (npad*8, 72) with per-block row order h*TB + n.
        s = s.reshape(g, TB, 8, 72).transpose(0, 2, 1, 3).reshape(npad * 8, 72)
        return s.astype(jnp.bfloat16)

    a = slab(x_even[:, 0:8, :])     # padded even rows 0..14
    b = slab(x_odd[:, 0:8, :])      # padded odd  rows 1..15
    c = slab(x_even[:, 1:9, :])     # padded even rows 2..16
    d = slab(x_odd[:, 1:9, :])      # padded odd  rows 3..17

    out = pl.pallas_call(
        _encoder_kernel,
        out_shape=jax.ShapeDtypeStruct((npad, 128), jnp.float32),
        grid=(g,),
        in_specs=[
            pl.BlockSpec((TB * 8, 72), lambda i: (i, 0)),        # a
            pl.BlockSpec((TB * 8, 72), lambda i: (i, 0)),        # b
            pl.BlockSpec((TB * 8, 72), lambda i: (i, 0)),        # c
            pl.BlockSpec((TB * 8, 72), lambda i: (i, 0)),        # d
            pl.BlockSpec((3, 72, 128), lambda i: (0, 0, 0)),     # conv1 weights
            pl.BlockSpec((1, 128), lambda i: (0, 0)),            # conv1 bias (tiled)
            pl.BlockSpec((3, 128, 64), lambda i: (0, 0, 0)),     # conv2 weights
            pl.BlockSpec((1, 64), lambda i: (0, 0)),             # conv2 bias (tiled)
            pl.BlockSpec((8, 64, 32), lambda i: (0, 0, 0)),      # fc1 weight (permuted)
            pl.BlockSpec((1, 32), lambda i: (0, 0)),             # fc1 bias
            pl.BlockSpec((32, 128), lambda i: (0, 0)),           # fc2 weight (padded)
            pl.BlockSpec((1, 128), lambda i: (0, 0)),            # fc2 bias (padded)
        ],
        out_specs=pl.BlockSpec((TB, 128), lambda i: (i, 0)),
        compiler_params=pltpu.CompilerParams(
            dimension_semantics=("parallel",)),
    )(a, b, c, d, prep["w1"], prep["b1"], prep["w2"], prep["b2"],
      prep["wfc1"], prep["bfc1"], prep["wfc2"], prep["bfc2"])
    return out[:n, :2]


# ----------------------------- pure-JAX reference ------------------------------

def encoder_reference(params, x):
    def conv(x, w, b, stride, pad):
        y = jax.lax.conv_general_dilated(
            x, w, window_strides=(stride, stride),
            padding=((pad, pad), (pad, pad)),
            dimension_numbers=("NCHW", "OIHW", "NCHW"))
        return jnp.tanh(y + b[None, :, None, None])
    x = x.astype(jnp.float32)
    x = conv(x, params["conv1_w"], params["conv1_b"], 1, 1)
    x = conv(x, params["conv2_w"], params["conv2_b"], 2, 1)
    x = x.reshape(x.shape[0], -1)
    x = jnp.tanh(x @ params["fc1_w"].T + params["fc1_b"])
    x = x @ params["fc2_w"].T + params["fc2_b"]
    return x


# ----------------------------------- main --------------------------------------

if __name__ == "__main__":
    key = jax.random.PRNGKey(0)
    ks = jax.random.split(key, 9)

    N, C, H, W = 2, 4, 16, 16            # small NCHW input
    x = jax.random.normal(ks[0], (N, C, H, W), jnp.float32)

    # Deterministic synthetic parameters (PyTorch conventions: OIHW / (out,in)).
    params = {
        "conv1_w": 0.1 * jax.random.normal(ks[1], (8, 4, 3, 3), jnp.float32),
        "conv1_b": 0.1 * jax.random.normal(ks[2], (8,), jnp.float32),
        "conv2_w": 0.1 * jax.random.normal(ks[3], (8, 8, 3, 3), jnp.float32),
        "conv2_b": 0.1 * jax.random.normal(ks[4], (8,), jnp.float32),
        "fc1_w":   0.1 * jax.random.normal(ks[5], (32, 8 * 8 * 8), jnp.float32),
        "fc1_b":   0.1 * jax.random.normal(ks[6], (32,), jnp.float32),
        "fc2_w":   0.1 * jax.random.normal(ks[7], (2, 32), jnp.float32),
        "fc2_b":   0.1 * jax.random.normal(ks[8], (2,), jnp.float32),
    }

    prep = preprocess_params(params)     # one-time, outside the hot path

    out = encoder_forward(prep, x)
    jax.block_until_ready(out)
    assert out.shape == (N, 2), out.shape

    ref = encoder_reference(params, x)
    # bf16 matmul operands with f32 accumulation -> 2e-2 tolerance vs f32 ref.
    np.testing.assert_allclose(np.asarray(out), np.asarray(ref), atol=2e-2, rtol=2e-2)

    print("KERNEL_OK")
</pallas_src>

<mosaic_0001>
module attributes {stable_mosaic.version = 11 : i64} {
  func.func @_encoder_kernel(%arg0: i32, %arg1: memref<256x72xbf16, #tpu.memory_space<vmem>>, %arg2: memref<256x72xbf16, #tpu.memory_space<vmem>>, %arg3: memref<256x72xbf16, #tpu.memory_space<vmem>>, %arg4: memref<256x72xbf16, #tpu.memory_space<vmem>>, %arg5: memref<3x72x128xbf16, #tpu.memory_space<vmem>>, %arg6: memref<1x128xf32, #tpu.memory_space<vmem>>, %arg7: memref<3x128x64xbf16, #tpu.memory_space<vmem>>, %arg8: memref<1x64xf32, #tpu.memory_space<vmem>>, %arg9: memref<8x64x32xbf16, #tpu.memory_space<vmem>>, %arg10: memref<1x32xf32, #tpu.memory_space<vmem>>, %arg11: memref<32x128xbf16, #tpu.memory_space<vmem>>, %arg12: memref<1x128xf32, #tpu.memory_space<vmem>>, %arg13: memref<32x128xf32, #tpu.memory_space<vmem>>) attributes {dimension_semantics = [#tpu.dimension_semantics<parallel>], iteration_bounds = array<i64: 1>, scalar_prefetch = 0 : i64, scratch_operands = 0 : i64, tpu.core_type = #tpu.core_type<tc>, window_params = [{transform_indices = @transform_0, window_bounds = array<i64: 256, 72>}, {transform_indices = @transform_1, window_bounds = array<i64: 256, 72>}, {transform_indices = @transform_2, window_bounds = array<i64: 256, 72>}, {transform_indices = @transform_3, window_bounds = array<i64: 256, 72>}, {pipeline_mode = #tpu.pipeline_mode<synchronous>, transform_indices = @transform_4, window_bounds = array<i64: 3, 72, 128>}, {pipeline_mode = #tpu.pipeline_mode<synchronous>, transform_indices = @transform_5, window_bounds = array<i64: 1, 128>}, {pipeline_mode = #tpu.pipeline_mode<synchronous>, transform_indices = @transform_6, window_bounds = array<i64: 3, 128, 64>}, {pipeline_mode = #tpu.pipeline_mode<synchronous>, transform_indices = @transform_7, window_bounds = array<i64: 1, 64>}, {pipeline_mode = #tpu.pipeline_mode<synchronous>, transform_indices = @transform_8, window_bounds = array<i64: 8, 64, 32>}, {pipeline_mode = #tpu.pipeline_mode<synchronous>, transform_indices = @transform_9, window_bounds = array<i64: 1, 32>}, {pipeline_mode = #tpu.pipeline_mode<synchronous>, transform_indices = @transform_10, window_bounds = array<i64: 32, 128>}, {pipeline_mode = #tpu.pipeline_mode<synchronous>, transform_indices = @transform_11, window_bounds = array<i64: 1, 128>}, {transform_indices = @transform_12, window_bounds = array<i64: 32, 128>}]} {
    %c0 = arith.constant 0 : index
    %c0_0 = arith.constant 0 : index
    %0 = vector.load %arg1[%c0, %c0_0] : memref<256x72xbf16, #tpu.memory_space<vmem>>, vector<256x72xbf16>
    %c0_1 = arith.constant 0 : index
    %c0_2 = arith.constant 0 : index
    %1 = vector.load %arg2[%c0_1, %c0_2] : memref<256x72xbf16, #tpu.memory_space<vmem>>, vector<256x72xbf16>
    %c0_3 = arith.constant 0 : index
    %c0_4 = arith.constant 0 : index
    %2 = vector.load %arg3[%c0_3, %c0_4] : memref<256x72xbf16, #tpu.memory_space<vmem>>, vector<256x72xbf16>
    %c0_5 = arith.constant 0 : index
    %c0_6 = arith.constant 0 : index
    %3 = vector.load %arg4[%c0_5, %c0_6] : memref<256x72xbf16, #tpu.memory_space<vmem>>, vector<256x72xbf16>
    %c0_7 = arith.constant 0 : index
    %c0_8 = arith.constant 0 : index
    %c0_9 = arith.constant 0 : index
    %4 = vector.load %arg5[%c0_7, %c0_8, %c0_9] : memref<3x72x128xbf16, #tpu.memory_space<vmem>>, vector<1x72x128xbf16>
    %5 = vector.shape_cast %4 : vector<1x72x128xbf16> to vector<72x128xbf16>
    %c1 = arith.constant 1 : index
    %c0_10 = arith.constant 0 : index
    %c0_11 = arith.constant 0 : index
    %6 = vector.load %arg5[%c1, %c0_10, %c0_11] : memref<3x72x128xbf16, #tpu.memory_space<vmem>>, vector<1x72x128xbf16>
    %7 = vector.shape_cast %6 : vector<1x72x128xbf16> to vector<72x128xbf16>
    %c2 = arith.constant 2 : index
    %c0_12 = arith.constant 0 : index
    %c0_13 = arith.constant 0 : index
    %8 = vector.load %arg5[%c2, %c0_12, %c0_13] : memref<3x72x128xbf16, #tpu.memory_space<vmem>>, vector<1x72x128xbf16>
    %9 = vector.shape_cast %8 : vector<1x72x128xbf16> to vector<72x128xbf16>
    %cst = arith.constant dense<0.000000e+00> : vector<256x128xf32>
    %10 = tpu.matmul %0, %5, %cst {dimension_numbers = #tpu.dot_dimension_numbers<[1], [0], [0], [1], [0, 0, 1, 1], [], []>} : vector<256x72xbf16>, vector<72x128xbf16>, vector<256x128xf32> -> vector<256x128xf32>
    %cst_14 = arith.constant dense<0.000000e+00> : vector<256x128xf32>
    %11 = tpu.matmul %1, %7, %cst_14 {dimension_numbers = #tpu.dot_dimension_numbers<[1], [0], [0], [1], [0, 0, 1, 1], [], []>} : vector<256x72xbf16>, vector<72x128xbf16>, vector<256x128xf32> -> vector<256x128xf32>
    %12 = arith.addf %10, %11 : vector<256x128xf32>
    %cst_15 = arith.constant dense<0.000000e+00> : vector<256x128xf32>
    %13 = tpu.matmul %2, %9, %cst_15 {dimension_numbers = #tpu.dot_dimension_numbers<[1], [0], [0], [1], [0, 0, 1, 1], [], []>} : vector<256x72xbf16>, vector<72x128xbf16>, vector<256x128xf32> -> vector<256x128xf32>
    %14 = arith.addf %12, %13 : vector<256x128xf32>
    %cst_16 = arith.constant dense<0.000000e+00> : vector<256x128xf32>
    %15 = tpu.matmul %1, %5, %cst_16 {dimension_numbers = #tpu.dot_dimension_numbers<[1], [0], [0], [1], [0, 0, 1, 1], [], []>} : vector<256x72xbf16>, vector<72x128xbf16>, vector<256x128xf32> -> vector<256x128xf32>
    %cst_17 = arith.constant dense<0.000000e+00> : vector<256x128xf32>
    %16 = tpu.matmul %2, %7, %cst_17 {dimension_numbers = #tpu.dot_dimension_numbers<[1], [0], [0], [1], [0, 0, 1, 1], [], []>} : vector<256x72xbf16>, vector<72x128xbf16>, vector<256x128xf32> -> vector<256x128xf32>
    %17 = arith.addf %15, %16 : vector<256x128xf32>
    %cst_18 = arith.constant dense<0.000000e+00> : vector<256x128xf32>
    %18 = tpu.matmul %3, %9, %cst_18 {dimension_numbers = #tpu.dot_dimension_numbers<[1], [0], [0], [1], [0, 0, 1, 1], [], []>} : vector<256x72xbf16>, vector<72x128xbf16>, vector<256x128xf32> -> vector<256x128xf32>
    %19 = arith.addf %17, %18 : vector<256x128xf32>
    %c0_19 = arith.constant 0 : index
    %c0_20 = arith.constant 0 : index
    %20 = vector.load %arg6[%c0_19, %c0_20] : memref<1x128xf32, #tpu.memory_space<vmem>>, vector<1x128xf32>
    %21 = vector.broadcast %20 : vector<1x128xf32> to vector<256x128xf32>
    %22 = arith.addf %14, %21 : vector<256x128xf32>
    %23 = math.tanh %22 : vector<256x128xf32>
    %24 = arith.truncf %23 : vector<256x128xf32> to vector<256x128xbf16>
    %c0_21 = arith.constant 0 : index
    %c0_22 = arith.constant 0 : index
    %25 = vector.load %arg6[%c0_21, %c0_22] : memref<1x128xf32, #tpu.memory_space<vmem>>, vector<1x128xf32>
    %26 = vector.broadcast %25 : vector<1x128xf32> to vector<256x128xf32>
    %27 = arith.addf %19, %26 : vector<256x128xf32>
    %28 = math.tanh %27 : vector<256x128xf32>
    %29 = arith.truncf %28 : vector<256x128xf32> to vector<256x128xbf16>
    %30 = vector.extract_strided_slice %29 {offsets = [0, 0], sizes = [224, 128], strides = [1, 1]} : vector<256x128xbf16> to vector<224x128xbf16>
    %c0_23 = arith.constant 0 : index
    %c0_24 = arith.constant 0 : index
    %c0_25 = arith.constant 0 : index
    %31 = vector.load %arg7[%c0_23, %c0_24, %c0_25] : memref<3x128x64xbf16, #tpu.memory_space<vmem>>, vector<1x128x64xbf16>
    %32 = vector.shape_cast %31 : vector<1x128x64xbf16> to vector<128x64xbf16>
    %cst_26 = arith.constant dense<0.000000e+00> : vector<224x64xf32>
    %33 = tpu.matmul %30, %32, %cst_26 {dimension_numbers = #tpu.dot_dimension_numbers<[1], [0], [0], [1], [0, 0, 1, 1], [], []>} : vector<224x128xbf16>, vector<128x64xbf16>, vector<224x64xf32> -> vector<224x64xf32>
    %cst_27 = arith.constant 0.000000e+00 : f32
    %34 = vector.broadcast %cst_27 : f32 to vector<32x64xf32>
    %35 = tpu.concatenate %34, %33 in 0 : vector<32x64xf32>, vector<224x64xf32> -> vector<256x64xf32>
    %c1_28 = arith.constant 1 : index
    %c0_29 = arith.constant 0 : index
    %c0_30 = arith.constant 0 : index
    %36 = vector.load %arg7[%c1_28, %c0_29, %c0_30] : memref<3x128x64xbf16, #tpu.memory_space<vmem>>, vector<1x128x64xbf16>
    %37 = vector.shape_cast %36 : vector<1x128x64xbf16> to vector<128x64xbf16>
    %cst_31 = arith.constant dense<0.000000e+00> : vector<256x64xf32>
    %38 = tpu.matmul %24, %37, %cst_31 {dimension_numbers = #tpu.dot_dimension_numbers<[1], [0], [0], [1], [0, 0, 1, 1], [], []>} : vector<256x128xbf16>, vector<128x64xbf16>, vector<256x64xf32> -> vector<256x64xf32>
    %39 = arith.addf %35, %38 : vector<256x64xf32>
    %c2_32 = arith.constant 2 : index
    %c0_33 = arith.constant 0 : index
    %c0_34 = arith.constant 0 : index
    %40 = vector.load %arg7[%c2_32, %c0_33, %c0_34] : memref<3x128x64xbf16, #tpu.memory_space<vmem>>, vector<1x128x64xbf16>
    %41 = vector.shape_cast %40 : vector<1x128x64xbf16> to vector<128x64xbf16>
    %cst_35 = arith.constant dense<0.000000e+00> : vector<256x64xf32>
    %42 = tpu.matmul %29, %41, %cst_35 {dimension_numbers = #tpu.dot_dimension_numbers<[1], [0], [0], [1], [0, 0, 1, 1], [], []>} : vector<256x128xbf16>, vector<128x64xbf16>, vector<256x64xf32> -> vector<256x64xf32>
    %43 = arith.addf %39, %42 : vector<256x64xf32>
    %c0_36 = arith.constant 0 : index
    %c0_37 = arith.constant 0 : index
    %44 = vector.load %arg8[%c0_36, %c0_37] : memref<1x64xf32, #tpu.memory_space<vmem>>, vector<1x64xf32>
    %45 = vector.broadcast %44 : vector<1x64xf32> to vector<256x64xf32>
    %46 = arith.addf %43, %45 : vector<256x64xf32>
    %47 = math.tanh %46 : vector<256x64xf32>
    %48 = arith.truncf %47 : vector<256x64xf32> to vector<256x64xbf16>
    %c0_38 = arith.constant 0 : index
    %c0_39 = arith.constant 0 : index
    %49 = vector.load %arg10[%c0_38, %c0_39] : memref<1x32xf32, #tpu.memory_space<vmem>>, vector<1x32xf32>
    %50 = vector.extract_strided_slice %48 {offsets = [0, 0], sizes = [32, 64], strides = [1, 1]} : vector<256x64xbf16> to vector<32x64xbf16>
    %c0_40 = arith.constant 0 : index
    %c0_41 = arith.constant 0 : index
    %c0_42 = arith.constant 0 : index
    %51 = vector.load %arg9[%c0_40, %c0_41, %c0_42] : memref<8x64x32xbf16, #tpu.memory_space<vmem>>, vector<1x64x32xbf16>
    %52 = vector.shape_cast %51 : vector<1x64x32xbf16> to vector<64x32xbf16>
    %cst_43 = arith.constant dense<0.000000e+00> : vector<32x32xf32>
    %53 = tpu.matmul %50, %52, %cst_43 {dimension_numbers = #tpu.dot_dimension_numbers<[1], [0], [0], [1], [0, 0, 1, 1], [], []>} : vector<32x64xbf16>, vector<64x32xbf16>, vector<32x32xf32> -> vector<32x32xf32>
    %54 = vector.broadcast %49 : vector<1x32xf32> to vector<32x32xf32>
    %55 = arith.addf %54, %53 : vector<32x32xf32>
    %56 = vector.extract_strided_slice %48 {offsets = [32, 0], sizes = [32, 64], strides = [1, 1]} : vector<256x64xbf16> to vector<32x64xbf16>
    %c1_44 = arith.constant 1 : index
    %c0_45 = arith.constant 0 : index
    %c0_46 = arith.constant 0 : index
    %57 = vector.load %arg9[%c1_44, %c0_45, %c0_46] : memref<8x64x32xbf16, #tpu.memory_space<vmem>>, vector<1x64x32xbf16>
    %58 = vector.shape_cast %57 : vector<1x64x32xbf16> to vector<64x32xbf16>
    %cst_47 = arith.constant dense<0.000000e+00> : vector<32x32xf32>
    %59 = tpu.matmul %56, %58, %cst_47 {dimension_numbers = #tpu.dot_dimension_numbers<[1], [0], [0], [1], [0, 0, 1, 1], [], []>} : vector<32x64xbf16>, vector<64x32xbf16>, vector<32x32xf32> -> vector<32x32xf32>
    %60 = arith.addf %55, %59 : vector<32x32xf32>
    %61 = vector.extract_strided_slice %48 {offsets = [64, 0], sizes = [32, 64], strides = [1, 1]} : vector<256x64xbf16> to vector<32x64xbf16>
    %c2_48 = arith.constant 2 : index
    %c0_49 = arith.constant 0 : index
    %c0_50 = arith.constant 0 : index
    %62 = vector.load %arg9[%c2_48, %c0_49, %c0_50] : memref<8x64x32xbf16, #tpu.memory_space<vmem>>, vector<1x64x32xbf16>
    %63 = vector.shape_cast %62 : vector<1x64x32xbf16> to vector<64x32xbf16>
    %cst_51 = arith.constant dense<0.000000e+00> : vector<32x32xf32>
    %64 = tpu.matmul %61, %63, %cst_51 {dimension_numbers = #tpu.dot_dimension_numbers<[1], [0], [0], [1], [0, 0, 1, 1], [], []>} : vector<32x64xbf16>, vector<64x32xbf16>, vector<32x32xf32> -> vector<32x32xf32>
    %65 = arith.addf %60, %64 : vector<32x32xf32>
    %66 = vector.extract_strided_slice %48 {offsets = [96, 0], sizes = [32, 64], strides = [1, 1]} : vector<256x64xbf16> to vector<32x64xbf16>
    %c3 = arith.constant 3 : index
    %c0_52 = arith.constant 0 : index
    %c0_53 = arith.constant 0 : index
    %67 = vector.load %arg9[%c3, %c0_52, %c0_53] : memref<8x64x32xbf16, #tpu.memory_space<vmem>>, vector<1x64x32xbf16>
    %68 = vector.shape_cast %67 : vector<1x64x32xbf16> to vector<64x32xbf16>
    %cst_54 = arith.constant dense<0.000000e+00> : vector<32x32xf32>
    %69 = tpu.matmul %66, %68, %cst_54 {dimension_numbers = #tpu.dot_dimension_numbers<[1], [0], [0], [1], [0, 0, 1, 1], [], []>} : vector<32x64xbf16>, vector<64x32xbf16>, vector<32x32xf32> -> vector<32x32xf32>
    %70 = arith.addf %65, %69 : vector<32x32xf32>
    %71 = vector.extract_strided_slice %48 {offsets = [128, 0], sizes = [32, 64], strides = [1, 1]} : vector<256x64xbf16> to vector<32x64xbf16>
    %c4 = arith.constant 4 : index
    %c0_55 = arith.constant 0 : index
    %c0_56 = arith.constant 0 : index
    %72 = vector.load %arg9[%c4, %c0_55, %c0_56] : memref<8x64x32xbf16, #tpu.memory_space<vmem>>, vector<1x64x32xbf16>
    %73 = vector.shape_cast %72 : vector<1x64x32xbf16> to vector<64x32xbf16>
    %cst_57 = arith.constant dense<0.000000e+00> : vector<32x32xf32>
    %74 = tpu.matmul %71, %73, %cst_57 {dimension_numbers = #tpu.dot_dimension_numbers<[1], [0], [0], [1], [0, 0, 1, 1], [], []>} : vector<32x64xbf16>, vector<64x32xbf16>, vector<32x32xf32> -> vector<32x32xf32>
    %75 = arith.addf %70, %74 : vector<32x32xf32>
    %76 = vector.extract_strided_slice %48 {offsets = [160, 0], sizes = [32, 64], strides = [1, 1]} : vector<256x64xbf16> to vector<32x64xbf16>
    %c5 = arith.constant 5 : index
    %c0_58 = arith.constant 0 : index
    %c0_59 = arith.constant 0 : index
    %77 = vector.load %arg9[%c5, %c0_58, %c0_59] : memref<8x64x32xbf16, #tpu.memory_space<vmem>>, vector<1x64x32xbf16>
    %78 = vector.shape_cast %77 : vector<1x64x32xbf16> to vector<64x32xbf16>
    %cst_60 = arith.constant dense<0.000000e+00> : vector<32x32xf32>
    %79 = tpu.matmul %76, %78, %cst_60 {dimension_numbers = #tpu.dot_dimension_numbers<[1], [0], [0], [1], [0, 0, 1, 1], [], []>} : vector<32x64xbf16>, vector<64x32xbf16>, vector<32x32xf32> -> vector<32x32xf32>
    %80 = arith.addf %75, %79 : vector<32x32xf32>
    %81 = vector.extract_strided_slice %48 {offsets = [192, 0], sizes = [32, 64], strides = [1, 1]} : vector<256x64xbf16> to vector<32x64xbf16>
    %c6 = arith.constant 6 : index
    %c0_61 = arith.constant 0 : index
    %c0_62 = arith.constant 0 : index
    %82 = vector.load %arg9[%c6, %c0_61, %c0_62] : memref<8x64x32xbf16, #tpu.memory_space<vmem>>, vector<1x64x32xbf16>
    %83 = vector.shape_cast %82 : vector<1x64x32xbf16> to vector<64x32xbf16>
    %cst_63 = arith.constant dense<0.000000e+00> : vector<32x32xf32>
    %84 = tpu.matmul %81, %83, %cst_63 {dimension_numbers = #tpu.dot_dimension_numbers<[1], [0], [0], [1], [0, 0, 1, 1], [], []>} : vector<32x64xbf16>, vector<64x32xbf16>, vector<32x32xf32> -> vector<32x32xf32>
    %85 = arith.addf %80, %84 : vector<32x32xf32>
    %86 = vector.extract_strided_slice %48 {offsets = [224, 0], sizes = [32, 64], strides = [1, 1]} : vector<256x64xbf16> to vector<32x64xbf16>
    %c7 = arith.constant 7 : index
    %c0_64 = arith.constant 0 : index
    %c0_65 = arith.constant 0 : index
    %87 = vector.load %arg9[%c7, %c0_64, %c0_65] : memref<8x64x32xbf16, #tpu.memory_space<vmem>>, vector<1x64x32xbf16>
    %88 = vector.shape_cast %87 : vector<1x64x32xbf16> to vector<64x32xbf16>
    %cst_66 = arith.constant dense<0.000000e+00> : vector<32x32xf32>
    %89 = tpu.matmul %86, %88, %cst_66 {dimension_numbers = #tpu.dot_dimension_numbers<[1], [0], [0], [1], [0, 0, 1, 1], [], []>} : vector<32x64xbf16>, vector<64x32xbf16>, vector<32x32xf32> -> vector<32x32xf32>
    %90 = arith.addf %85, %89 : vector<32x32xf32>
    %91 = math.tanh %90 : vector<32x32xf32>
    %92 = arith.truncf %91 : vector<32x32xf32> to vector<32x32xbf16>
    %c0_67 = arith.constant 0 : index
    %c0_68 = arith.constant 0 : index
    %93 = vector.load %arg11[%c0_67, %c0_68] : memref<32x128xbf16, #tpu.memory_space<vmem>>, vector<32x128xbf16>
    %cst_69 = arith.constant dense<0.000000e+00> : vector<32x128xf32>
    %94 = tpu.matmul %92, %93, %cst_69 {dimension_numbers = #tpu.dot_dimension_numbers<[1], [0], [0], [1], [0, 0, 1, 1], [], []>} : vector<32x32xbf16>, vector<32x128xbf16>, vector<32x128xf32> -> vector<32x128xf32>
    %c0_70 = arith.constant 0 : index
    %c0_71 = arith.constant 0 : index
    %95 = vector.load %arg12[%c0_70, %c0_71] : memref<1x128xf32, #tpu.memory_space<vmem>>, vector<1x128xf32>
    %96 = vector.broadcast %95 : vector<1x128xf32> to vector<32x128xf32>
    %97 = arith.addf %94, %96 : vector<32x128xf32>
    %c0_72 = arith.constant 0 : index
    %c0_73 = arith.constant 0 : index
    %98 = vector.load %arg13[%c0_72, %c0_73] : memref<32x128xf32, #tpu.memory_space<vmem>>, vector<32x128xf32>
    tpu.vector_store %arg13[%c0_72, %c0_73], %97 {strides = array<i32>} : memref<32x128xf32, #tpu.memory_space<vmem>>, vector<32x128xf32>,
    return
  }
  func.func @transform_0(%arg0: i32) -> (i32, i32) {
    %c0_i32 = arith.constant 0 : i32
    %c0_i32_0 = arith.constant 0 : i32
    return %arg0, %c0_i32 : i32, i32
  }
  func.func @transform_1(%arg0: i32) -> (i32, i32) {
    %c0_i32 = arith.constant 0 : i32
    %c0_i32_0 = arith.constant 0 : i32
    return %arg0, %c0_i32 : i32, i32
  }
  func.func @transform_2(%arg0: i32) -> (i32, i32) {
    %c0_i32 = arith.constant 0 : i32
    %c0_i32_0 = arith.constant 0 : i32
    return %arg0, %c0_i32 : i32, i32
  }
  func.func @transform_3(%arg0: i32) -> (i32, i32) {
    %c0_i32 = arith.constant 0 : i32
    %c0_i32_0 = arith.constant 0 : i32
    return %arg0, %c0_i32 : i32, i32
  }
  func.func @transform_4(%arg0: i32) -> (i32, i32, i32) {
    %c0_i32 = arith.constant 0 : i32
    %c0_i32_0 = arith.constant 0 : i32
    %c0_i32_1 = arith.constant 0 : i32
    %c0_i32_2 = arith.constant 0 : i32
    return %c0_i32, %c0_i32_0, %c0_i32_1 : i32, i32, i32
  }
  func.func @transform_5(%arg0: i32) -> (i32, i32) {
    %c0_i32 = arith.constant 0 : i32
    %c0_i32_0 = arith.constant 0 : i32
    %c0_i32_1 = arith.constant 0 : i32
    return %c0_i32, %c0_i32_0 : i32, i32
  }
  func.func @transform_6(%arg0: i32) -> (i32, i32, i32) {
    %c0_i32 = arith.constant 0 : i32
    %c0_i32_0 = arith.constant 0 : i32
    %c0_i32_1 = arith.constant 0 : i32
    %c0_i32_2 = arith.constant 0 : i32
    return %c0_i32, %c0_i32_0, %c0_i32_1 : i32, i32, i32
  }
  func.func @transform_7(%arg0: i32) -> (i32, i32) {
    %c0_i32 = arith.constant 0 : i32
    %c0_i32_0 = arith.constant 0 : i32
    %c0_i32_1 = arith.constant 0 : i32
    return %c0_i32, %c0_i32_0 : i32, i32
  }
  func.func @transform_8(%arg0: i32) -> (i32, i32, i32) {
    %c0_i32 = arith.constant 0 : i32
    %c0_i32_0 = arith.constant 0 : i32
    %c0_i32_1 = arith.constant 0 : i32
    %c0_i32_2 = arith.constant 0 : i32
    return %c0_i32, %c0_i32_0, %c0_i32_1 : i32, i32, i32
  }
  func.func @transform_9(%arg0: i32) -> (i32, i32) {
    %c0_i32 = arith.constant 0 : i32
    %c0_i32_0 = arith.constant 0 : i32
    %c0_i32_1 = arith.constant 0 : i32
    return %c0_i32, %c0_i32_0 : i32, i32
  }
  func.func @transform_10(%arg0: i32) -> (i32, i32) {
    %c0_i32 = arith.constant 0 : i32
    %c0_i32_0 = arith.constant 0 : i32
    %c0_i32_1 = arith.constant 0 : i32
    return %c0_i32, %c0_i32_0 : i32, i32
  }
  func.func @transform_11(%arg0: i32) -> (i32, i32) {
    %c0_i32 = arith.constant 0 : i32
    %c0_i32_0 = arith.constant 0 : i32
    %c0_i32_1 = arith.constant 0 : i32
    return %c0_i32, %c0_i32_0 : i32, i32
  }
  func.func @transform_12(%arg0: i32) -> (i32, i32) {
    %c0_i32 = arith.constant 0 : i32
    %c0_i32_0 = arith.constant 0 : i32
    return %arg0, %c0_i32 : i32, i32
  }
}

</mosaic_0001>

<bundles_post_ra>
// kernel: encoder_forward.1
= control target key start
LH: loop header
LB: loop body
LE: loop exit
PB: predicated region body
PF: predicated region fallthrough
CT: control target
= control target key end

     0   :  { %vm306_vm0 = vcmask 588800   ;;  %vm355_vm1 = vcmask 1043456   ;;  %vm2845_vm2 = vcmask 523264   ;;  %vm3584_vm3 = vcmask 261120   ;;  %s6477_s4 = inlined_call_operand.vmem [shape: bf16[3,72,128], index: 4, kind: input, shape index: {}]   ;;  %s6478_s1 = inlined_call_operand.vmem [shape: bf16[256,72], index: 1, kind: input, shape index: {}]   ;;  %s6479_s2 = inlined_call_operand.vmem [shape: bf16[256,72], index: 2, kind: input, shape index: {}]   ;;  %s6480_s0 = inlined_call_operand.vmem [shape: bf16[256,72], index: 0, kind: input, shape index: {}]   ;;  %s6481_s3 = inlined_call_operand.vmem [shape: bf16[256,72], index: 3, kind: input, shape index: {}]   ;;  %s6482_s6 = inlined_call_operand.vmem [shape: bf16[3,128,64], index: 6, kind: input, shape index: {}]   ;;  %s6483_s5 = inlined_call_operand.vmem [shape: f32[1,128], index: 5, kind: input, shape index: {}]   ;;  %s6484_s8 = inlined_call_operand.vmem [shape: bf16[8,64,32], index: 8, kind: input, shape index: {}]   ;;  %s6485_s7 = inlined_call_operand.vmem [shape: f32[1,64], index: 7, kind: input, shape index: {}]   ;;  %s6486_s10 = inlined_call_operand.vmem [shape: bf16[32,128], index: 10, kind: input, shape index: {}]   ;;  %s6487_s9 = inlined_call_operand.vmem [shape: f32[1,32], index: 9, kind: input, shape index: {}]   ;;  %s6488_s11 = inlined_call_operand.vmem [shape: f32[1,128], index: 11, kind: input, shape index: {}]   ;;  %s6489_s12 = inlined_call_operand.vmem [shape: f32[32,128], index: 12, kind: output, shape index: {}]  }
   0x1   :  { %v4990_v0 = vld [vmem:[%s6477_s4 + $0x24] sm:$0xff]   ;;  %v4991_v1 = vld [vmem:[%s6477_s4 + $0x2c] sm:$0xff]   ;;  %v4992_v2 = vld [vmem:[%s6477_s4 + $0x34] sm:$0xff]  }
   0x2   :  { %4257 = vmatprep.subr.bf16.mxu0 %v4990_v0  ;;  %4753 = vmatprep.subr.bf16.mxu1 %v4990_v0  ;;  %v5404_v3 = vld [vmem:[%s6478_s1] sm:$0xff]   ;;  %v5409_v4 = vld [vmem:[%s6478_s1 + $0x50] sm:$0xff]   ;;  %v5427_v8 = vld [vmem:[%s6478_s1 + $0x8] sm:$0xff]  }
   0x3   :  { %4258 = vmatpush3.bf16.msra.mxu0 %v4990_v0  ;;  %4758 = vmatpush3.bf16.msra.mxu1 %v4990_v0  ;;  %v4993_v5 = vld [vmem:[%s6477_s4 + $0x3c] sm:$0xff]   ;;  %v4994_v6 = vld [vmem:[%s6477_s4 + $0x44] ss:$0 sps:$4 sm:$0xff]   ;;  %v5440_v11 = vld [vmem:[%s6478_s1 + $0x10] sm:$0xff]  }
   0x4   :  { %4259 = vmatprep.subr.bf16.mxu0 %v4991_v1  ;;  %4754 = vmatprep.subr.bf16.mxu1 %v4991_v1  ;;  %v357_v7 = vsel %vm355_vm1, %v4994_v6, 0  ;;  %v5007_v9 = vld [vmem:[%s6477_s4] sm:$0xff]   ;;  %v5435_v10 = vld [vmem:[%s6478_s1 + $0x58] sm:$0xff]   ;;  %v5011_v13 = vld [vmem:[%s6477_s4 + $0x8] sm:$0xff]  }
   0x5   :  { %4267 = vmatprep.mubr.msk.bf16.mxu0 %vm306_vm0, %v5404_v3  ;;  %4287 = vmatprep.mubr.msk.bf16.mxu1 %vm306_vm0, %v5409_v4  ;;  %v5445_v12 = vld [vmem:[%s6478_s1 + $0x60] sm:$0xff]   ;;  %v5461_v14 = vld [vmem:[%s6478_s1 + $0x18] sm:$0xff]   ;;  %v5466_v15 = vld [vmem:[%s6478_s1 + $0x68] sm:$0xff]  }
   0x6   :  { %v5471_v16 = vld [vmem:[%s6478_s1 + $0x20] sm:$0xff]   ;;  %v5476_v17 = vld [vmem:[%s6478_s1 + $0x70] sm:$0xff]   ;;  %v5017_v19 = vld [vmem:[%s6477_s4 + $0x18] sm:$0xff]  }
   0x7   :  { %4260 = vmatpush3.bf16.msra.mxu0 %v4991_v1  ;;  %4759 = vmatpush3.bf16.msra.mxu1 %v4991_v1  ;;  %v5013_v18 = vld [vmem:[%s6477_s4 + $0x10] sm:$0xff]   ;;  %v5495_v20 = vld [vmem:[%s6478_s1 + $0x28] sm:$0xff]   ;;  %v5500_v21 = vld [vmem:[%s6478_s1 + $0x78] sm:$0xff]  }
   0x8   :  { %4261 = vmatprep.subr.bf16.mxu0 %v4992_v2  ;;  %4755 = vmatprep.subr.bf16.mxu1 %v4992_v2  ;;  %v5505_v22 = vld [vmem:[%s6478_s1 + $0x30] sm:$0xff]   ;;  %v5511_v23 = vld [vmem:[%s6479_s2] sm:$0xff]   ;;  %v5527_v25 = vld [vmem:[%s6478_s1 + $0x38] sm:$0xff]  }
   0x9   :  { %v5019_v24 = vld [vmem:[%s6477_s4 + $0x20] ss:$0 sps:$4 sm:$0xff]   ;;  %v5532_v26 = vld [vmem:[%s6479_s2 + $0x8] sm:$0xff]   ;;  %v5544_v29 = vld [vmem:[%s6479_s2 + $0x10] sm:$0xff]  }
   0xa   :  { %v676_v27 = vsel %vm355_vm1, %v5019_v24, 0  ;;  %v5539_v28 = vld [vmem:[%s6478_s1 + $0x40] sm:$0xff]   ;;  %v5557_v30 = vld [vmem:[%s6478_s1 + $0x48] sm:$0xff]   ;;  %v5562_v31 = vld [vmem:[%s6479_s2 + $0x18] sm:$0xff]  }
   0xb   :  { %4262 = vmatpush3.bf16.msra.mxu0 %v4992_v2  ;;  %4760 = vmatpush3.bf16.msra.mxu1 %v4992_v2  ;;  %v5020_v32 = vld [vmem:[%s6480_s0] sm:$0xff]   ;;  %v5579_v34 = vld [vmem:[%s6477_s4 + $0x48] sm:$0xff]   ;;  %v5024_v37 = vld [vmem:[%s6480_s0 + $0x10] sm:$0xff]  }
   0xc   :  { %4263 = vmatprep.subr.bf16.mxu0 %v4993_v5  ;;  %4756 = vmatprep.subr.bf16.mxu1 %v4993_v5  ;;  %v5570_v33 = vld [vmem:[%s6479_s2 + $0x20] sm:$0xff]   ;;  %v5022_v35 = vld [vmem:[%s6480_s0 + $0x8] sm:$0xff]   ;;  %v5599_v38 = vld [vmem:[%s6479_s2 + $0x30] sm:$0xff]  }
   0xd   :  { %v5591_v36 = vld [vmem:[%s6479_s2 + $0x28] sm:$0xff]   ;;  %v5605_v39 = vld [vmem:[%s6477_s4 + $0x50] sm:$0xff]   ;;  %v5026_v40 = vld [vmem:[%s6480_s0 + $0x18] sm:$0xff]  }
   0xe   :  { %v5619_v41 = vld [vmem:[%s6479_s2 + $0x38] sm:$0xff]   ;;  %v5028_v43 = vld [vmem:[%s6480_s0 + $0x20] sm:$0xff]   ;;  %v5052_v46 = vld [vmem:[%s6477_s4 + $0x68] ss:$0 sps:$4 sm:$0xff]  }
   0xf   :  { %4264 = vmatpush3.bf16.msra.mxu0 %v4993_v5  ;;  %4761 = vmatpush3.bf16.msra.mxu1 %v4993_v5  ;;  %v5627_v42 = vld [vmem:[%s6477_s4 + $0x58] sm:$0xff]   ;;  %v5635_v44 = vld [vmem:[%s6479_s2 + $0x40] sm:$0xff]   ;;  %v5030_v47 = vld [vmem:[%s6480_s0 + $0x28] sm:$0xff]   ;;  %v995_v51 = vsel %vm355_vm1, %v5052_v46, 0 }
  0x10   :  { %4983 = vmatprep.subr.msk.bf16.mxu0 %vm355_vm1, %v4994_v6  ;;  %4984 = vmatprep.subr.msk.bf16.mxu1 %vm355_vm1, %v4994_v6  ;;  %v5051_v45 = vld [vmem:[%s6477_s4 + $0x60] sm:$0xff]   ;;  %v5657_v48 = vld [vmem:[%s6479_s2 + $0x48] sm:$0xff]   ;;  %v5032_v49 = vld [vmem:[%s6480_s0 + $0x30] sm:$0xff]  }
  0x11   :  { %v5666_v50 = vld [vmem:[%s6479_s2 + $0x50] sm:$0xff]   ;;  %v5034_v52 = vld [vmem:[%s6480_s0 + $0x38] sm:$0xff]   ;;  %v5036_v54 = vld [vmem:[%s6480_s0 + $0x40] sm:$0xff]  }
  0x12   :  { %v5682_v53 = vld [vmem:[%s6479_s2 + $0x58] sm:$0xff]   ;;  %v5690_v55 = vld [vmem:[%s6479_s2 + $0x60] sm:$0xff]   ;;  %v5038_v56 = vld [vmem:[%s6480_s0 + $0x48] sm:$0xff]  }
  0x13   :  { %4266 = vmatpush3.bf16.msra.mxu0 %v357_v7  ;;  %4762 = vmatpush3.bf16.msra.mxu1 %v357_v7  ;;  %v5039_v57 = vld [vmem:[%s6479_s2 + $0x68] sm:$0xff]   ;;  %v5040_v58 = vld [vmem:[%s6480_s0 + $0x50] sm:$0xff]   ;;  %v5042_v60 = vld [vmem:[%s6480_s0 + $0x58] sm:$0xff]  }
  0x14   :  { %4383 = vmatprep.subr.bf16.mxu1 %v4990_v0  ;;  %4299 = vmatprep.subr.bf16.mxu0 %v5007_v9  ;;  %v5041_v59 = vld [vmem:[%s6479_s2 + $0x70] sm:$0xff]   ;;  %v5043_v61 = vld [vmem:[%s6479_s2 + $0x78] sm:$0xff]   ;;  %v5045_v62 = vld [vmem:[%s6480_s0 + $0x60] sm:$0xff]  }
  0x15   :  { %v5046_v63 = vld [vmem:[%s6480_s0 + $0x68] sm:$0xff]  }
  0x16   :  { %4268 = vmatmul.mubr.msk.bf16.vlgmr.msra.gmra.mrb[0].mxu0 %vm306_vm0, %v5427_v8  ;;  %4288 = vmatmul.mubr.msk.bf16.vlgmr.msra.gmra.mrb[0].mxu1 %vm306_vm0, %v5435_v10 }
  0x17   :  { %4384 = vmatpush3.bf16.msra.mxu1 %v4990_v0  ;;  %4271 = vmatprep.mubr.msk.bf16.mxu0 %vm306_vm0, %v5440_v11  ;;  %v5049_v0 = vld [vmem:[%s6480_s0 + $0x70] sm:$0xff]  }
  0x18   :  { %4385 = vmatprep.subr.bf16.mxu1 %v4991_v1  ;;  %4291 = vmatprep.mubr.msk.bf16.mxu1 %vm306_vm0, %v5445_v12 }
  0x19   :  { %4300 = vmatpush3.bf16.msra.mxu0 %v5007_v9 }
  0x1a   :  { %4301 = vmatprep.subr.bf16.mxu0 %v5011_v13 }
  0x1b   :  { %4386 = vmatpush3.bf16.msra.mxu1 %v4991_v1  ;;  %v5050_v1 = vld [vmem:[%s6480_s0 + $0x78] sm:$0xff]  }
  0x1c   :  { %4387 = vmatprep.subr.bf16.mxu1 %v4992_v2 }
  0x1d   :  { %4302 = vmatpush3.bf16.msra.mxu0 %v5011_v13 }
  0x1e   :  { %4272 = vmatmul.mubr.msk.bf16.gmra.mrb[4].mxu0 %vm306_vm0, %v5461_v14  ;;  %4292 = vmatmul.mubr.msk.bf16.gmra.mrb[4].mxu1 %vm306_vm0, %v5466_v15 }
  0x1f   :  { %4388 = vmatpush3.bf16.msra.mxu1 %v4992_v2  ;;  %4275 = vmatprep.mubr.msk.bf16.mxu0 %vm306_vm0, %v5471_v16  ;;  %v5053_v2 = vld [vmem:[%s6481_s3] sm:$0xff]  }
  0x20   :  { %4295 = vmatprep.mubr.msk.bf16.mxu1 %vm306_vm0, %v5476_v17  ;;  %4389 = vmatprep.subr.bf16.mxu1 %v4993_v5 }
  0x21   :  { %4303 = vmatprep.subr.bf16.mxu0 %v5013_v18 }
  0x22   :  { %4304 = vmatpush3.bf16.msra.mxu0 %v5013_v18 }
  0x23   :  { %4390 = vmatpush3.bf16.msra.mxu1 %v4993_v5  ;;  %4305 = vmatprep.subr.bf16.mxu0 %v5017_v19  ;;  %v5056_v5 = vld [vmem:[%s6481_s3 + $0x18] sm:$0xff]  }
  0x24   :  { %4987 = vmatprep.subr.msk.bf16.mxu1 %vm355_vm1, %v4994_v6  ;;  %v5057_v6 = vld [vmem:[%s6481_s3 + $0x20] sm:$0xff]  }
  0x26   :  { %4276 = vmatmul.mubr.msk.bf16.gmra.mrb[8].mxu0 %vm306_vm0, %v5495_v20  ;;  %4296 = vmatmul.mubr.msk.bf16.gmra.mrb[8].mxu1 %vm306_vm0, %v5500_v21 }
  0x27   :  { %4392 = vmatpush3.bf16.msra.mxu1 %v357_v7  ;;  %4279 = vmatprep.mubr.msk.bf16.mxu0 %vm306_vm0, %v5505_v22  ;;  %v5058_v7 = vld [vmem:[%s6481_s3 + $0x28] sm:$0xff]  }
  0x28   :  { %4393 = vmatprep.mubr.msk.bf16.mxu1 %vm306_vm0, %v5511_v23  ;;  %4425 = vmatprep.subr.bf16.mxu1 %v5007_v9 }
  0x29   :  { %4306 = vmatpush3.bf16.msra.mxu0 %v5017_v19 }
  0x2a   :  { %4985 = vmatprep.subr.msk.bf16.mxu0 %vm355_vm1, %v5019_v24 }
  0x2d   :  { %4308 = vmatpush3.bf16.msra.mxu0 %v676_v27 }
  0x2e   :  { %4280 = vmatmul.mubr.msk.bf16.gmra.mrb[12].mxu0 %vm306_vm0, %v5527_v25  ;;  %4394 = vmatmul.mubr.msk.bf16.vlgmr.msra.gmra.mrb[12].mxu1 %vm306_vm0, %v5532_v26 }
  0x2f   :  { %4426 = vmatpush3.bf16.msra.mxu1 %v5007_v9  ;;  %4283 = vmatprep.mubr.msk.bf16.mxu0 %vm306_vm0, %v5539_v28  ;;  %v5060_v9 = vld [vmem:[%s6481_s3 + $0x38] sm:$0xff]  }
  0x30   :  { %4397 = vmatprep.mubr.msk.bf16.mxu1 %vm306_vm0, %v5544_v29  ;;  %4427 = vmatprep.subr.bf16.mxu1 %v5011_v13 }
  0x31   :  { %4341 = vmatprep.subr.bf16.mxu0 %v5579_v34 }
  0x33   :  { %4428 = vmatpush3.bf16.msra.mxu1 %v5011_v13  ;;  %v5064_v13 = vld [vmem:[%s6481_s3 + $0x58] sm:$0xff]  }
  0x34   :  { %4429 = vmatprep.subr.bf16.mxu1 %v5013_v18 }
  0x36   :  { %4284 = vmatmul.mubr.msk.bf16.gmra.mrb[16].mxu0 %vm306_vm0, %v5557_v30  ;;  %4398 = vmatmul.mubr.msk.bf16.gmra.mrb[16].mxu1 %vm306_vm0, %v5562_v31 }
  0x37   :  { %4309 = vmatprep.mubr.msk.bf16.mxu0 %vm306_vm0, %v5020_v32  ;;  %4401 = vmatprep.mubr.msk.bf16.mxu1 %vm306_vm0, %v5570_v33 }
  0x38   :  { %4430 = vmatpush3.bf16.msra.mxu1 %v5013_v18  ;;  %v5070_v18 = vld [vmem:[%s6482_s6 + $0x8] sm:$0xff]  }
  0x39   :  { %4431 = vmatprep.subr.bf16.mxu1 %v5017_v19 }
  0x3c   :  { %4432 = vmatpush3.bf16.msra.mxu1 %v5017_v19  ;;  %v5068_v19 = vld [vmem:[%s6481_s3 + $0x78] sm:$0xff]  }
  0x3d   :  { %4988 = vmatprep.subr.msk.bf16.mxu1 %vm355_vm1, %v5019_v24 }
  0x3e   :  { %4310 = vmatmul.mubr.msk.bf16.vlgmr.msra.gmra.mrb[0].mxu0 %vm306_vm0, %v5022_v35  ;;  %4402 = vmatmul.mubr.msk.bf16.gmra.mrb[20].mxu1 %vm306_vm0, %v5591_v36  ;;  %v5074_v35 = vld [vmem:[%s6482_s6 + $0x28] sm:$0xff]  }
  0x3f   :  { %4313 = vmatprep.mubr.msk.bf16.mxu0 %vm306_vm0, %v5024_v37  ;;  %4405 = vmatprep.mubr.msk.bf16.mxu1 %vm306_vm0, %v5599_v38  ;;  %v5076_v37 = vld [vmem:[%s6482_s6 + $0x38] sm:$0xff]  }
  0x40   :  { %4434 = vmatpush3.bf16.msra.mxu1 %v676_v27  ;;  %4342 = vmatpush3.bf16.msra.mxu0 %v5579_v34 }
  0x41   :  { %4343 = vmatprep.subr.bf16.mxu0 %v5605_v39  ;;  %4467 = vmatprep.subr.bf16.mxu1 %v5579_v34 }
  0x44   :  { %4344 = vmatpush3.bf16.msra.mxu0 %v5605_v39 }
  0x45   :  { %4345 = vmatprep.subr.bf16.mxu0 %v5627_v42 }
  0x46   :  { %4314 = vmatmul.mubr.msk.bf16.gmra.mrb[4].mxu0 %vm306_vm0, %v5026_v40  ;;  %4406 = vmatmul.mubr.msk.bf16.gmra.mrb[24].mxu1 %vm306_vm0, %v5619_v41 }
  0x47   :  { %4317 = vmatprep.mubr.msk.bf16.mxu0 %vm306_vm0, %v5028_v43  ;;  %4409 = vmatprep.mubr.msk.bf16.mxu1 %vm306_vm0, %v5635_v44 }
  0x48   :  { %4346 = vmatpush3.bf16.msra.mxu0 %v5627_v42 }
  0x49   :  { %4347 = vmatprep.subr.bf16.mxu0 %v5051_v45 }
  0x4c   :  { %4348 = vmatpush3.bf16.msra.mxu0 %v5051_v45 }
  0x4d   :  { %4986 = vmatprep.subr.msk.bf16.mxu0 %vm355_vm1, %v5052_v46 }
  0x4e   :  { %4318 = vmatmul.mubr.msk.bf16.gmra.mrb[8].mxu0 %vm306_vm0, %v5030_v47  ;;  %4410 = vmatmul.mubr.msk.bf16.gmra.mrb[28].mxu1 %vm306_vm0, %v5657_v48 }
  0x4f   :  { %4321 = vmatprep.mubr.msk.bf16.mxu0 %vm306_vm0, %v5032_v49  ;;  %4413 = vmatprep.mubr.msk.bf16.mxu1 %vm306_vm0, %v5666_v50 }
  0x50   :  { %4350 = vmatpush3.bf16.msra.mxu0 %v995_v51 }
  0x56   :  { %4322 = vmatmul.mubr.msk.bf16.gmra.mrb[12].mxu0 %vm306_vm0, %v5034_v52  ;;  %4414 = vmatmul.mubr.msk.bf16.gmra.mrb[32].mxu1 %vm306_vm0, %v5682_v53 }
  0x57   :  { %4325 = vmatprep.mubr.msk.bf16.mxu0 %vm306_vm0, %v5036_v54  ;;  %4417 = vmatprep.mubr.msk.bf16.mxu1 %vm306_vm0, %v5690_v55 }
  0x5e   :  { %4326 = vmatmul.mubr.msk.bf16.gmra.mrb[16].mxu0 %vm306_vm0, %v5038_v56  ;;  %4418 = vmatmul.mubr.msk.bf16.gmra.mrb[36].mxu1 %vm306_vm0, %v5039_v57 }
  0x5f   :  { %4329 = vmatprep.mubr.msk.bf16.mxu0 %vm306_vm0, %v5040_v58  ;;  %4421 = vmatprep.mubr.msk.bf16.mxu1 %vm306_vm0, %v5041_v59 }
  0x66   :  { %4330 = vmatmul.mubr.msk.bf16.gmra.mrb[20].mxu0 %vm306_vm0, %v5042_v60  ;;  %4422 = vmatmul.mubr.msk.bf16.gmra.mrb[40].mxu1 %vm306_vm0, %v5043_v61 }
  0x67   :  { %4333 = vmatprep.mubr.msk.bf16.mxu0 %vm306_vm0, %v5045_v62  ;;  %4435 = vmatprep.mubr.msk.bf16.mxu1 %vm306_vm0, %v5404_v3  ;;  %v5054_v3 = vld [vmem:[%s6481_s3 + $0x8] sm:$0xff]  }
  0x6e   :  { %4334 = vmatmul.mubr.msk.bf16.gmra.mrb[24].mxu0 %vm306_vm0, %v5046_v63  ;;  %4436 = vmatmul.mubr.msk.bf16.vlgmr.msra.gmra.mrb[12].mxu1 %vm306_vm0, %v5427_v8  ;;  %v5059_v8 = vld [vmem:[%s6481_s3 + $0x30] sm:$0xff]  }
  0x6f   :  { %4468 = vmatpush3.bf16.msra.mxu1 %v5579_v34  ;;  %4337 = vmatprep.mubr.msk.bf16.mxu0 %vm306_vm0, %v5049_v0 }
  0x70   :  { %4439 = vmatprep.mubr.msk.bf16.mxu1 %vm306_vm0, %v5440_v11  ;;  %4469 = vmatprep.subr.bf16.mxu1 %v5605_v39  ;;  %v5062_v11 = vld [vmem:[%s6481_s3 + $0x48] sm:$0xff]  }
  0x73   :  { %4470 = vmatpush3.bf16.msra.mxu1 %v5605_v39  ;;  %v5926_v39 = vld [vmem:[%s6483_s5] ss:$0 sm:$0xff] }
  0x74   :  { %4471 = vmatprep.subr.bf16.mxu1 %v5627_v42 }
  0x76   :  { %4338 = vmatmul.mubr.msk.bf16.gmra.mrb[28].mxu0 %vm306_vm0, %v5050_v1  ;;  %4440 = vmatmul.mubr.msk.bf16.gmra.mrb[16].mxu1 %vm306_vm0, %v5461_v14  ;;  %v5065_v14 = vld [vmem:[%s6481_s3 + $0x60] sm:$0xff]  }
  0x77   :  { %4351 = vmatprep.mubr.msk.bf16.mxu0 %vm306_vm0, %v5511_v23  ;;  %4443 = vmatprep.mubr.msk.bf16.mxu1 %vm306_vm0, %v5471_v16  ;;  %v5069_v16 = vld [vmem:[%s6482_s6] sm:$0xff]  }
  0x78   :  { %4472 = vmatpush3.bf16.msra.mxu1 %v5627_v42  ;;  %4509 = vmatprep.subr.bf16.mxu0 %v5069_v16 }
  0x79   :  { %4473 = vmatprep.subr.bf16.mxu1 %v5051_v45 }
  0x7c   :  { %4474 = vmatpush3.bf16.msra.mxu1 %v5051_v45 }
  0x7d   :  { %4989 = vmatprep.subr.msk.bf16.mxu1 %vm355_vm1, %v5052_v46 }
  0x7e   :  { %4352 = vmatmul.mubr.msk.bf16.vlgmr.msra.gmra.mrb[0].mxu0 %vm306_vm0, %v5532_v26  ;;  %4444 = vmatmul.mubr.msk.bf16.gmra.mrb[20].mxu1 %vm306_vm0, %v5495_v20  ;;  %v5071_v20 = vld [vmem:[%s6482_s6 + $0x10] sm:$0xff]  }
  0x7f   :  { %4355 = vmatprep.mubr.msk.bf16.mxu0 %vm306_vm0, %v5544_v29  ;;  %4447 = vmatprep.mubr.msk.bf16.mxu1 %vm306_vm0, %v5505_v22 }
  0x80   :  { %4476 = vmatpush3.bf16.msra.mxu1 %v995_v51  ;;  %4510 = vmatpush3.bf16.msra.mxu0 %v5069_v16 }
  0x81   :  { %4511 = vmatprep.subr.bf16.mxu0 %v5070_v18 }
  0x84   :  { %4512 = vmatpush3.bf16.msra.mxu0 %v5070_v18 }
  0x85   :  { %4513 = vmatprep.subr.bf16.mxu0 %v5071_v20 }
  0x86   :  { %4356 = vmatmul.mubr.msk.bf16.gmra.mrb[4].mxu0 %vm306_vm0, %v5562_v31  ;;  %4448 = vmatmul.mubr.msk.bf16.gmra.mrb[24].mxu1 %vm306_vm0, %v5527_v25  ;;  %v5072_v25 = vld [vmem:[%s6482_s6 + $0x18] sm:$0xff]  }
  0x87   :  { %4359 = vmatprep.mubr.msk.bf16.mxu0 %vm306_vm0, %v5570_v33  ;;  %4451 = vmatprep.mubr.msk.bf16.mxu1 %vm306_vm0, %v5539_v28 }
  0x88   :  { %4514 = vmatpush3.bf16.msra.mxu0 %v5071_v20 }
  0x89   :  { %4515 = vmatprep.subr.bf16.mxu0 %v5072_v25 }
  0x8c   :  { %4516 = vmatpush3.bf16.msra.mxu0 %v5072_v25 }
  0x8e   :  { %4360 = vmatmul.mubr.msk.bf16.gmra.mrb[8].mxu0 %vm306_vm0, %v5591_v36  ;;  %4452 = vmatmul.mubr.msk.bf16.gmra.mrb[28].mxu1 %vm306_vm0, %v5557_v30  ;;  %v5073_v30 = vld [vmem:[%s6482_s6 + $0x20] sm:$0xff]   ;;  %v5075_v36 = vld [vmem:[%s6482_s6 + $0x30] sm:$0xff]  }
  0x8f   :  { %4363 = vmatprep.mubr.msk.bf16.mxu0 %vm306_vm0, %v5599_v38  ;;  %4455 = vmatprep.mubr.msk.bf16.mxu1 %vm306_vm0, %v5409_v4  ;;  %v5055_v4 = vld [vmem:[%s6481_s3 + $0x10] sm:$0xff]   ;;  %v5920_v38 = vld [vmem:[%s6482_s6 + $0x40] sm:$0xff]  }
  0x90   :  { %4517 = vmatprep.subr.bf16.mxu0 %v5073_v30 }
  0x91   :  { %4518 = vmatpush3.bf16.msra.mxu0 %v5073_v30 }
  0x92   :  { %4519 = vmatprep.subr.bf16.mxu0 %v5074_v35 }
  0x95   :  { %4520 = vmatpush3.bf16.msra.mxu0 %v5074_v35 }
  0x96   :  { %4364 = vmatmul.mubr.msk.bf16.gmra.mrb[12].mxu0 %vm306_vm0, %v5619_v41  ;;  %4456 = vmatmul.mubr.msk.bf16.gmra.mrb[32].mxu1 %vm306_vm0, %v5435_v10  ;;  %v5061_v10 = vld [vmem:[%s6481_s3 + $0x40] sm:$0xff]  }
  0x97   :  { %4367 = vmatprep.mubr.msk.bf16.mxu0 %vm306_vm0, %v5635_v44  ;;  %4459 = vmatprep.mubr.msk.bf16.mxu1 %vm306_vm0, %v5445_v12  ;;  %v5063_v12 = vld [vmem:[%s6481_s3 + $0x50] sm:$0xff]  }
  0x98   :  { %4521 = vmatprep.subr.bf16.mxu0 %v5075_v36 }
  0x99   :  { %4522 = vmatpush3.bf16.msra.mxu0 %v5075_v36 }
  0x9a   :  { %4523 = vmatprep.subr.bf16.mxu0 %v5076_v37 }
  0x9d   :  { %4524 = vmatpush3.bf16.msra.mxu0 %v5076_v37 }
  0x9e   :  { %4368 = vmatmul.mubr.msk.bf16.gmra.mrb[16].mxu0 %vm306_vm0, %v5657_v48  ;;  %4460 = vmatmul.mubr.msk.bf16.gmra.mrb[36].mxu1 %vm306_vm0, %v5466_v15  ;;  %v5066_v15 = vld [vmem:[%s6481_s3 + $0x68] sm:$0xff]  }
  0x9f   :  { %4371 = vmatprep.mubr.msk.bf16.mxu0 %vm306_vm0, %v5666_v50  ;;  %4463 = vmatprep.mubr.msk.bf16.mxu1 %vm306_vm0, %v5476_v17  ;;  %v5067_v17 = vld [vmem:[%s6481_s3 + $0x70] sm:$0xff]  }
  0xa0   :  { %4553 = vmatprep.subr.bf16.mxu0 %v5920_v38 }
  0xa6   :  { %4372 = vmatmul.mubr.msk.bf16.gmra.mrb[20].mxu0 %vm306_vm0, %v5682_v53  ;;  %4464 = vmatmul.mubr.msk.bf16.gmra.mrb[40].mxu1 %vm306_vm0, %v5500_v21 }
  0xa7   :  { %4375 = vmatprep.mubr.msk.bf16.mxu0 %vm306_vm0, %v5690_v55  ;;  %4477 = vmatprep.mubr.msk.bf16.mxu1 %vm306_vm0, %v5053_v2 }
  0xae   :  { %4376 = vmatmul.mubr.msk.bf16.gmra.mrb[24].mxu0 %vm306_vm0, %v5039_v57  ;;  %4478 = vmatmul.mubr.msk.bf16.vlgmr.msra.gmra.mrb[12].mxu1 %vm306_vm0, %v5054_v3 }
  0xaf   :  { %4379 = vmatprep.mubr.msk.bf16.mxu0 %vm306_vm0, %v5041_v59  ;;  %4481 = vmatprep.mubr.msk.bf16.mxu1 %vm306_vm0, %v5055_v4 }
  0xb6   :  { %4380 = vmatmul.mubr.msk.bf16.gmra.mrb[28].mxu0 %vm306_vm0, %v5043_v61  ;;  %4482 = vmatmul.mubr.msk.bf16.gmra.mrb[16].mxu1 %vm306_vm0, %v5056_v5 }
  0xb7   :  { %4485 = vmatprep.mubr.msk.bf16.mxu1 %vm306_vm0, %v5057_v6 }
  0xbe   :  { %4486 = vmatmul.mubr.msk.bf16.gmra.mrb[20].mxu1 %vm306_vm0, %v5058_v7 }
  0xbf   :  { %4489 = vmatprep.mubr.msk.bf16.mxu1 %vm306_vm0, %v5059_v8 }
  0xc6   :  { %4490 = vmatmul.mubr.msk.bf16.gmra.mrb[24].mxu1 %vm306_vm0, %v5060_v9 }
  0xc7   :  { %4493 = vmatprep.mubr.msk.bf16.mxu1 %vm306_vm0, %v5061_v10 }
  0xce   :  { %4494 = vmatmul.mubr.msk.bf16.gmra.mrb[28].mxu1 %vm306_vm0, %v5062_v11 }
  0xcf   :  { %4497 = vmatprep.mubr.msk.bf16.mxu1 %vm306_vm0, %v5063_v12 }
  0xd6   :  { %4498 = vmatmul.mubr.msk.bf16.gmra.mrb[32].mxu1 %vm306_vm0, %v5064_v13 }
  0xd7   :  { %4501 = vmatprep.mubr.msk.bf16.mxu1 %vm306_vm0, %v5065_v14 }
  0xde   :  { %4502 = vmatmul.mubr.msk.bf16.gmra.mrb[36].mxu1 %vm306_vm0, %v5066_v15 }
  0xdf   :  { %4505 = vmatprep.mubr.msk.bf16.mxu1 %vm306_vm0, %v5067_v17 }
  0xe6   :  { %4506 = vmatmul.mubr.msk.bf16.gmra.mrb[40].mxu1 %vm306_vm0, %v5068_v19 }
  0xe9   :  { %v5878_v21 = vpop.f32.mrb[0].mxu1 }
  0xea   :  { %v5880_v22 = vpop.f32.mrb[1].mxu1 }
  0xeb   :  { %v5882_v23 = vpop.f32.mrb[2].mxu1 }
  0xec   :  { %v5884_v24 = vpop.f32.mrb[3].mxu1 }
  0xf1   :  { %v5889_v26 = vpop.f32.mrb[4].mxu1 }
  0xf2   :  { %v5891_v27 = vpop.f32.mrb[5].mxu1 }
  0xf3   :  { %v5893_v28 = vpop.f32.mrb[6].mxu1 }
  0xf4   :  { %v5895_v29 = vpop.f32.mrb[7].mxu1 }
  0xf9   :  { %v5900_v31 = vpop.f32.mrb[8].mxu1 }
  0xfa   :  { %v5902_v32 = vpop.f32.mrb[9].mxu1 }
  0xfb   :  { %v5904_v33 = vpop.f32.mrb[10].mxu1 }
  0xfc   :  { %v5906_v34 = vpop.f32.mrb[11].mxu1 }
 0x151   :  { %v4353_v40 = vpop.f32.mrb[0].mxu0 }
 0x152   :  { %v1842_v41 = vadd.f32 %v4353_v40, %v5926_v39  ;;  %v1031_v42 = vpop.f32.mrb[1].mxu0 }
 0x153   :  { %v1840_v43 = vadd.f32 %v5926_v39, %v1031_v42  ;;  %v4354_v44 = vpop.f32.mrb[2].mxu0 }
 0x154   :  { %5127 = vtanh.f32 %v1842_v41  ;;  %v1843_v45 = vadd.f32 %v4354_v44, %v5926_v39  ;;  %v1034_v46 = vpop.f32.mrb[3].mxu0 }
 0x155   :  { %5129 = vtanh.f32 %v1840_v43  ;;  %v1841_v47 = vadd.f32 %v5926_v39, %v1034_v46 }
 0x156   :  { %5131 = vtanh.f32 %v1843_v45 }
 0x157   :  { %5133 = vtanh.f32 %v1841_v47 }
 0x159   :  { %v4357_v48 = vpop.f32.mrb[4].mxu0 }
 0x15a   :  { %v1846_v49 = vadd.f32 %v4357_v48, %v5926_v39  ;;  %v1047_v50 = vpop.f32.mrb[5].mxu0 }
 0x15b   :  { %v1844_v51 = vadd.f32 %v5926_v39, %v1047_v50  ;;  %v4358_v52 = vpop.f32.mrb[6].mxu0 }
 0x15c   :  { %5135 = vtanh.f32 %v1846_v49  ;;  %v1847_v53 = vadd.f32 %v4358_v52, %v5926_v39  ;;  %v1050_v54 = vpop.f32.mrb[7].mxu0 }
 0x15d   :  { %5137 = vtanh.f32 %v1844_v51  ;;  %v1845_v55 = vadd.f32 %v5926_v39, %v1050_v54 }
 0x15e   :  { %v5936_v56 = vpop.eup %5127  ;;  %5139 = vtanh.f32 %v1847_v53 }
 0x15f   :  { %v5938_v57 = vpop.eup %5129  ;;  %5141 = vtanh.f32 %v1845_v55 }
 0x160   :  { %v5940_v58 = vpop.eup %5131 }
 0x161   :  { %v5942_v59 = vpop.eup %5133  ;;  %v4361_v60 = vpop.f32.mrb[8].mxu0  ;;  %v1905_v61 = vpack.c.bf16 %v5940_v58, %v5936_v56  ;;  %v5089_v56 = vld [vmem:[%s6482_s6 + $0xa0] sm:$0xff]   ;;  %v5090_v58 = vld [vmem:[%s6482_s6 + $0xa8] sm:$0xff]  }
 0x162   :  { %v1850_v62 = vadd.f32 %v4361_v60, %v5926_v39  ;;  %v1063_v63 = vpop.f32.mrb[9].mxu0  ;;  %v1904_v0 = vpack.c.bf16 %v5942_v59, %v5938_v57  ;;  %v5095_v57 = vld [vmem:[%s6484_s8 + $0x10] sm:$0xff]  }
 0x163   :  { %v1848_v1 = vadd.f32 %v5926_v39, %v1063_v63  ;;  %v4362_v2 = vpop.f32.mrb[10].mxu0  ;;  %v5087_v59 = vld [vmem:[%s6482_s6 + $0x90] sm:$0xff]  }
 0x164   :  { %5143 = vtanh.f32 %v1850_v62  ;;  %v1851_v3 = vadd.f32 %v4362_v2, %v5926_v39  ;;  %v1066_v4 = vpop.f32.mrb[11].mxu0 }
 0x165   :  { %5145 = vtanh.f32 %v1848_v1  ;;  %v1849_v5 = vadd.f32 %v5926_v39, %v1066_v4 }
 0x166   :  { %v5952_v6 = vpop.eup %5135  ;;  %5147 = vtanh.f32 %v1851_v3 }
 0x167   :  { %v5954_v7 = vpop.eup %5137  ;;  %5149 = vtanh.f32 %v1849_v5 }
 0x168   :  { %v5956_v8 = vpop.eup %5139 }
 0x169   :  { %v5958_v9 = vpop.eup %5141  ;;  %v4365_v10 = vpop.f32.mrb[12].mxu0  ;;  %v1907_v11 = vpack.c.bf16 %v5956_v8, %v5952_v6  ;;  %v5092_v8 = vld [vmem:[%s6482_s6 + $0xb8] sm:$0xff]  }
 0x16a   :  { %v1854_v12 = vadd.f32 %v4365_v10, %v5926_v39  ;;  %v1079_v13 = vpop.f32.mrb[13].mxu0  ;;  %v1906_v14 = vpack.c.bf16 %v5958_v9, %v5954_v7  ;;  %v5091_v7 = vld [vmem:[%s6482_s6 + $0xb0] sm:$0xff]  }
 0x16b   :  { %v1852_v15 = vadd.f32 %v5926_v39, %v1079_v13  ;;  %v4366_v16 = vpop.f32.mrb[14].mxu0 }
 0x16c   :  { %5151 = vtanh.f32 %v1854_v12  ;;  %v1855_v17 = vadd.f32 %v4366_v16, %v5926_v39  ;;  %v1082_v18 = vpop.f32.mrb[15].mxu0 }
 0x16d   :  { %5153 = vtanh.f32 %v1852_v15  ;;  %v1853_v19 = vadd.f32 %v5926_v39, %v1082_v18 }
 0x16e   :  { %v5968_v20 = vpop.eup %5143  ;;  %5155 = vtanh.f32 %v1855_v17 }
 0x16f   :  { %v5970_v25 = vpop.eup %5145  ;;  %5157 = vtanh.f32 %v1853_v19 }
 0x170   :  { %v5972_v30 = vpop.eup %5147 }
 0x171   :  { %v5974_v35 = vpop.eup %5149  ;;  %v4369_v36 = vpop.f32.mrb[16].mxu0 }
 0x172   :  { %v1858_v40 = vadd.f32 %v4369_v36, %v5926_v39  ;;  %v1095_v41 = vpop.f32.mrb[17].mxu0  ;;  %v1908_v42 = vpack.c.bf16 %v5974_v35, %v5970_v25 }
 0x173   :  { %v1856_v43 = vadd.f32 %v5926_v39, %v1095_v41  ;;  %v4370_v44 = vpop.f32.mrb[18].mxu0 }
 0x174   :  { %5159 = vtanh.f32 %v1858_v40  ;;  %v1859_v45 = vadd.f32 %v4370_v44, %v5926_v39  ;;  %v1098_v46 = vpop.f32.mrb[19].mxu0 }
 0x175   :  { %5161 = vtanh.f32 %v1856_v43  ;;  %v1857_v47 = vadd.f32 %v5926_v39, %v1098_v46 }
 0x176   :  { %v5984_v48 = vpop.eup %5151  ;;  %5163 = vtanh.f32 %v1859_v45 }
 0x177   :  { %v5986_v49 = vpop.eup %5153  ;;  %5165 = vtanh.f32 %v1857_v47 }
 0x178   :  { %v5988_v50 = vpop.eup %5155 }
 0x179   :  { %v5990_v51 = vpop.eup %5157  ;;  %v4373_v52 = vpop.f32.mrb[20].mxu0  ;;  %v6492_v9 = vpack.c.bf16 %v5988_v50, %v5984_v48  ;;  %v5097_v50 = vld [vmem:[%s6484_s8 + $0x20] sm:$0xff]  }
 0x17a   :  { %v4763_v54 = vadd.f32 %v4373_v52, %v5878_v21  ;;  %v1111_v55 = vpop.f32.mrb[21].mxu0  ;;  %v6491_v6 = vpack.c.bf16 %v5990_v51, %v5986_v49  ;;  %v5096_v49 = vld [vmem:[%s6484_s8 + $0x18] sm:$0xff]   ;;  %v6283_v51 = vld [vmem:[%s6485_s7] ss:$0 sm:$0xff] }
 0x17b   :  { %v4764_v62 = vadd.f32 %v1111_v55, %v5880_v22  ;;  %v4374_v63 = vpop.f32.mrb[22].mxu0 }
 0x17c   :  { %v1862_v1 = vadd.f32 %v4763_v54, %v5926_v39  ;;  %v4765_v2 = vadd.f32 %v4374_v63, %v5882_v23  ;;  %v1114_v3 = vpop.f32.mrb[23].mxu0 }
 0x17d   :  { %v4766_v4 = vadd.f32 %v1114_v3, %v5884_v24  ;;  %v1860_v21 = vadd.f32 %v4764_v62, %v5926_v39 }
 0x17e   :  { %v6001_v5 = vpop.eup %5159  ;;  %v1863_v10 = vadd.f32 %v4765_v2, %v5926_v39  ;;  %5167 = vtanh.f32 %v1862_v1 }
 0x17f   :  { %v6004_v12 = vpop.eup %5161  ;;  %v1861_v13 = vadd.f32 %v4766_v4, %v5926_v39 }
 0x180   :  { %v6008_v22 = vpop.eup %5163  ;;  %5169 = vtanh.f32 %v1863_v10 }
 0x181   :  { %v6010_v15 = vpop.eup %5165  ;;  %5171 = vtanh.f32 %v1861_v13  ;;  %v4377_v23 = vpop.f32.mrb[24].mxu0 }
 0x182   :  { %v4479_v16 = vpop.f32.mrb[12].mxu1  ;;  %v4767_v17 = vadd.f32 %v4377_v23, %v5889_v26  ;;  %v1127_v19 = vpop.f32.mrb[25].mxu0  ;;  %5173 = vtanh.f32 %v1860_v21 }
 0x183   :  { %v1922_v18 = vadd.f32 %v4479_v16, %v5926_v39  ;;  %v1674_v36 = vpop.f32.mrb[13].mxu1  ;;  %v4768_v41 = vadd.f32 %v1127_v19, %v5891_v27  ;;  %v4378_v44 = vpop.f32.mrb[26].mxu0 }
 0x184   :  { %v1920_v43 = vadd.f32 %v5926_v39, %v1674_v36  ;;  %v4480_v45 = vpop.f32.mrb[14].mxu1  ;;  %v1866_v46 = vadd.f32 %v4767_v17, %v5926_v39  ;;  %v4769_v47 = vadd.f32 %v4378_v44, %v5893_v28  ;;  %v1130_v26 = vpop.f32.mrb[27].mxu0 }
 0x185   :  { %5175 = vtanh.f32 %v1922_v18  ;;  %v1677_v52 = vpop.f32.mrb[15].mxu1  ;;  %v1864_v54 = vadd.f32 %v4768_v41, %v5926_v39  ;;  %v1923_v55 = vadd.f32 %v4480_v45, %v5926_v39  ;;  %v4770_v62 = vadd.f32 %v1130_v26, %v5895_v29 }
 0x186   :  { %5177 = vtanh.f32 %v1920_v43  ;;  %v1867_v27 = vadd.f32 %v4769_v47, %v5926_v39  ;;  %v1921_v1 = vadd.f32 %v5926_v39, %v1677_v52 }
 0x187   :  { %5179 = vtanh.f32 %v1866_v46  ;;  %v1865_v63 = vadd.f32 %v4770_v62, %v5926_v39 }
 0x188   :  { %5181 = vtanh.f32 %v1864_v54  ;;  %v6028_v2 = vpop.eup %5167 }
 0x189   :  { %5183 = vtanh.f32 %v1867_v27  ;;  %v4381_v28 = vpop.f32.mrb[28].mxu0  ;;  %v4483_v3 = vpop.f32.mrb[16].mxu1 }
 0x18a   :  { %5185 = vtanh.f32 %v1923_v55  ;;  %v6030_v4 = vpop.eup %5169  ;;  %v4771_v10 = vadd.f32 %v4381_v28, %v5900_v31  ;;  %v1926_v29 = vadd.f32 %v4483_v3, %v5926_v39  ;;  %v1143_v21 = vpop.f32.mrb[29].mxu0 }
 0x18b   :  { %5187 = vtanh.f32 %v1865_v63  ;;  %v1690_v13 = vpop.f32.mrb[17].mxu1  ;;  %v6034_v23 = vpop.eup %5171  ;;  %v4772_v16 = vadd.f32 %v1143_v21, %v5902_v32  ;;  %v6496_v25 = vpack.c.bf16 %v6030_v4, %v6028_v2 }
 0x18c   :  { %5189 = vtanh.f32 %v1921_v1  ;;  %v1924_v17 = vadd.f32 %v5926_v39, %v1690_v13  ;;  %v4382_v18 = vpop.f32.mrb[30].mxu0  ;;  %v4484_v19 = vpop.f32.mrb[18].mxu1  ;;  %v1870_v41 = vadd.f32 %v4771_v10, %v5926_v39 }
 0x18d   :  { %5191 = vtanh.f32 %v1926_v29  ;;  %v4773_v31 = vadd.f32 %v4382_v18, %v5904_v33  ;;  %v1146_v43 = vpop.f32.mrb[31].mxu0  ;;  %v1693_v44 = vpop.f32.mrb[19].mxu1  ;;  %v1868_v46 = vadd.f32 %v4772_v16, %v5926_v39  ;;  %v1927_v32 = vadd.f32 %v4484_v19, %v5926_v39 }
 0x18e   :  { %v6042_v45 = vpop.eup %5173  ;;  %5193 = vtanh.f32 %v1924_v17  ;;  %v4774_v47 = vadd.f32 %v1146_v43, %v5906_v34  ;;  %v1925_v62 = vadd.f32 %v5926_v39, %v1693_v44 }
 0x18f   :  { %v5176_v26 = vpop.eup %5175  ;;  %5195 = vtanh.f32 %v1870_v41  ;;  %v1871_v52 = vadd.f32 %v4773_v31, %v5926_v39 }
 0x190   :  { %v5178_v55 = vpop.eup %5177  ;;  %5197 = vtanh.f32 %v1868_v46  ;;  %v1869_v33 = vadd.f32 %v4774_v47, %v5926_v39  ;;  %v5078_v47 = vld [vmem:[%s6482_s6 + $0x48] sm:$0xff]  }
 0x191   :  { %v6052_v27 = vpop.eup %5179  ;;  %5199 = vtanh.f32 %v1871_v52  ;;  %v4487_v34 = vpop.f32.mrb[20].mxu1 }
 0x192   :  { %v6054_v63 = vpop.eup %5181  ;;  %5201 = vtanh.f32 %v1927_v32  ;;  %v1930_v28 = vadd.f32 %v4487_v34, %v5926_v39  ;;  %v1706_v3 = vpop.f32.mrb[21].mxu1 }
 0x193   :  { %v6056_v1 = vpop.eup %5183  ;;  %5203 = vtanh.f32 %v1869_v33  ;;  %v1928_v29 = vadd.f32 %v5926_v39, %v1706_v3  ;;  %v4488_v21 = vpop.f32.mrb[22].mxu1 }
 0x194   :  { %v5186_v10 = vpop.eup %5185  ;;  %5205 = vtanh.f32 %v1925_v62  ;;  %v1931_v17 = vadd.f32 %v4488_v21, %v5926_v39  ;;  %v1709_v18 = vpop.f32.mrb[23].mxu1  ;;  %v6498_v35 = vpack.c.bf16 %v6056_v1, %v6052_v27 }
 0x195   :  { %v6062_v16 = vpop.eup %5187  ;;  %5207 = vtanh.f32 %v1930_v28  ;;  %v6065_v19 = vpack.c.bf16 %v5186_v10, %v5176_v26  ;;  %v1929_v31 = vadd.f32 %v5926_v39, %v1709_v18 }
 0x196   :  { %v5190_v41 = vpop.eup %5189  ;;  %5209 = vtanh.f32 %v1928_v29  ;;  %v5079_v29 = vld [vmem:[%s6482_s6 + $0x50] sm:$0xff]  }
 0x197   :  { %v5192_v44 = vpop.eup %5191  ;;  %5211 = vtanh.f32 %v1931_v17  ;;  %v6070_v46 = vpack.c.bf16 %v5190_v41, %v5178_v55 }
 0x198   :  { %v5194_v32 = vpop.eup %5193  ;;  %5213 = vtanh.f32 %v1929_v31 }
 0x199   :  { %v6075_v52 = vpop.eup %5195  ;;  %4525 = vmatprep.mubr.bf16.mxu0 %v6070_v46  ;;  %v4491_v33 = vpop.f32.mrb[24].mxu1 }
 0x19a   :  { %v6078_v26 = vpop.eup %5197  ;;  %4526 = vmatmul.mubr.bf16.vlgmr.msra.gmra.mrb[32].mxu0 %v6065_v19  ;;  %v1934_v55 = vadd.f32 %v4491_v33, %v5926_v39  ;;  %v1722_v34 = vpop.f32.mrb[25].mxu1 }
 0x19b   :  { %v6081_v62 = vpop.eup %5199  ;;  %4554 = vmatpush3.bf16.msra.mxu0 %v5920_v38  ;;  %v1932_v3 = vadd.f32 %v5926_v39, %v1722_v34  ;;  %v4492_v10 = vpop.f32.mrb[26].mxu1 }
 0x19c   :  { %v5202_v28 = vpop.eup %5201  ;;  %4555 = vmatprep.subr.bf16.mxu0 %v5078_v47  ;;  %5215 = vtanh.f32 %v1934_v55  ;;  %v1935_v38 = vadd.f32 %v4492_v10, %v5926_v39  ;;  %v1725_v18 = vpop.f32.mrb[27].mxu1  ;;  %v6500_v48 = vpack.c.bf16 %v6081_v62, %v6075_v52 }
 0x19d   :  { %v6091_v17 = vpop.eup %5203  ;;  %v6094_v41 = vpack.c.bf16 %v5202_v28, %v5192_v44  ;;  %5217 = vtanh.f32 %v1932_v3  ;;  %v1933_v33 = vadd.f32 %v5926_v39, %v1725_v18  ;;  %v5080_v44 = vld [vmem:[%s6482_s6 + $0x58] sm:$0xff]  }
 0x19e   :  { %v5206_v31 = vpop.eup %5205  ;;  %5219 = vtanh.f32 %v1935_v38 }
 0x19f   :  { %v5208_v13 = vpop.eup %5207  ;;  %v6099_v43 = vpack.c.bf16 %v5206_v31, %v5194_v32  ;;  %4556 = vmatpush3.bf16.msra.mxu0 %v5078_v47  ;;  %5221 = vtanh.f32 %v1933_v33  ;;  %v5081_v33 = vld [vmem:[%s6482_s6 + $0x60] sm:$0xff]  }
 0x1a0   :  { %v5210_v21 = vpop.eup %5209  ;;  %4557 = vmatprep.subr.bf16.mxu0 %v5079_v29 }
 0x1a1   :  { %v5212_v55 = vpop.eup %5211  ;;  %4529 = vmatprep.mubr.bf16.mxu0 %v6099_v43  ;;  %v4495_v3 = vpop.f32.mrb[28].mxu1 }
 0x1a2   :  { %v5214_v28 = vpop.eup %5213  ;;  %4530 = vmatmul.mubr.bf16.gmra.mrb[36].mxu0 %v6094_v41  ;;  %v6106_v10 = vpack.c.bf16 %v5212_v55, %v5208_v13  ;;  %v1938_v32 = vadd.f32 %v4495_v3, %v5926_v39  ;;  %v1738_v38 = vpop.f32.mrb[29].mxu1  ;;  %v5082_v55 = vld [vmem:[%s6482_s6 + $0x68] sm:$0xff]  }
 0x1a3   :  { %v6109_v47 = vpack.c.bf16 %v5214_v28, %v5210_v21  ;;  %4558 = vmatpush3.bf16.msra.mxu0 %v5079_v29  ;;  %v1936_v18 = vadd.f32 %v5926_v39, %v1738_v38  ;;  %v4496_v31 = vpop.f32.mrb[30].mxu1 }
 0x1a4   :  { %4559 = vmatprep.subr.bf16.mxu0 %v5080_v44  ;;  %5223 = vtanh.f32 %v1938_v32  ;;  %v1939_v34 = vadd.f32 %v4496_v31, %v5926_v39  ;;  %v1741_v36 = vpop.f32.mrb[31].mxu1 }
 0x1a5   :  { %4533 = vmatprep.mubr.bf16.mxu0 %v6109_v47  ;;  %5225 = vtanh.f32 %v1936_v18  ;;  %v1937_v13 = vadd.f32 %v5926_v39, %v1741_v36 }
 0x1a6   :  { %v5216_v21 = vpop.eup %5215  ;;  %5227 = vtanh.f32 %v1939_v34 }
 0x1a7   :  { %4560 = vmatpush3.bf16.msra.mxu0 %v5080_v44  ;;  %v5218_v29 = vpop.eup %5217  ;;  %5229 = vtanh.f32 %v1937_v13  ;;  %v5083_v13 = vld [vmem:[%s6482_s6 + $0x70] sm:$0xff]  }
 0x1a8   :  { %4561 = vmatprep.subr.bf16.mxu0 %v5081_v33  ;;  %v5220_v28 = vpop.eup %5219 }
 0x1a9   :  { %v5222_v3 = vpop.eup %5221  ;;  %v4499_v32 = vpop.f32.mrb[32].mxu1  ;;  %v6122_v38 = vpack.c.bf16 %v5220_v28, %v5216_v21  ;;  %v5084_v28 = vld [vmem:[%s6482_s6 + $0x78] sm:$0xff]  }
 0x1aa   :  { %4534 = vmatmul.mubr.bf16.gmra.mrb[40].mxu0 %v6106_v10  ;;  %v1942_v18 = vadd.f32 %v4499_v32, %v5926_v39  ;;  %v1754_v36 = vpop.f32.mrb[33].mxu1  ;;  %v6125_v31 = vpack.c.bf16 %v5222_v3, %v5218_v29 }
 0x1ab   :  { %4562 = vmatpush3.bf16.msra.mxu0 %v5081_v33  ;;  %v1940_v34 = vadd.f32 %v5926_v39, %v1754_v36  ;;  %v4500_v44 = vpop.f32.mrb[34].mxu1 }
 0x1ac   :  { %4563 = vmatprep.subr.bf16.mxu0 %v5082_v55  ;;  %5231 = vtanh.f32 %v1942_v18  ;;  %v1943_v54 = vadd.f32 %v4500_v44, %v5926_v39  ;;  %v1757_v24 = vpop.f32.mrb[35].mxu1  ;;  %4537 = vmatprep.mubr.bf16.mxu0 %v6125_v31 }
 0x1ad   :  { %5233 = vtanh.f32 %v1940_v34  ;;  %v1941_v21 = vadd.f32 %v5926_v39, %v1757_v24 }
 0x1ae   :  { %v5224_v29 = vpop.eup %5223  ;;  %5235 = vtanh.f32 %v1943_v54 }
 0x1af   :  { %4564 = vmatpush3.bf16.msra.mxu0 %v5082_v55  ;;  %v5226_v33 = vpop.eup %5225  ;;  %5237 = vtanh.f32 %v1941_v21  ;;  %v5085_v21 = vld [vmem:[%s6482_s6 + $0x80] sm:$0xff]  }
 0x1b0   :  { %4565 = vmatprep.subr.bf16.mxu0 %v5083_v13  ;;  %v5228_v3 = vpop.eup %5227 }
 0x1b1   :  { %v5230_v32 = vpop.eup %5229  ;;  %v4503_v18 = vpop.f32.mrb[36].mxu1  ;;  %v6138_v36 = vpack.c.bf16 %v5228_v3, %v5224_v29 }
 0x1b2   :  { %4538 = vmatmul.mubr.bf16.gmra.mrb[44].mxu0 %v6122_v38  ;;  %v1946_v34 = vadd.f32 %v4503_v18, %v5926_v39  ;;  %v1770_v24 = vpop.f32.mrb[37].mxu1  ;;  %v6141_v44 = vpack.c.bf16 %v5230_v32, %v5226_v33 }
 0x1b3   :  { %4566 = vmatpush3.bf16.msra.mxu0 %v5083_v13  ;;  %v1944_v54 = vadd.f32 %v5926_v39, %v1770_v24  ;;  %v4504_v55 = vpop.f32.mrb[38].mxu1 }
 0x1b4   :  { %4567 = vmatprep.subr.bf16.mxu0 %v5084_v28  ;;  %5239 = vtanh.f32 %v1946_v34  ;;  %v1947_v40 = vadd.f32 %v4504_v55, %v5926_v39  ;;  %v1773_v53 = vpop.f32.mrb[39].mxu1  ;;  %4541 = vmatprep.mubr.bf16.mxu0 %v6141_v44 }
 0x1b5   :  { %5241 = vtanh.f32 %v1944_v54  ;;  %v1945_v29 = vadd.f32 %v5926_v39, %v1773_v53 }
 0x1b6   :  { %v5232_v33 = vpop.eup %5231  ;;  %5243 = vtanh.f32 %v1947_v40 }
 0x1b7   :  { %4568 = vmatpush3.bf16.msra.mxu0 %v5084_v28  ;;  %v5234_v13 = vpop.eup %5233  ;;  %5245 = vtanh.f32 %v1945_v29 }
 0x1b8   :  { %4601 = vmatprep.subr.bf16.mxu0 %v5085_v21  ;;  %v5236_v3 = vpop.eup %5235 }
 0x1b9   :  { %v5238_v32 = vpop.eup %5237  ;;  %v4507_v18 = vpop.f32.mrb[40].mxu1  ;;  %v6151_v34 = vpack.c.bf16 %v5236_v3, %v5232_v33 }
 0x1ba   :  { %4542 = vmatmul.mubr.bf16.gmra.mrb[48].mxu0 %v6138_v36  ;;  %v1950_v24 = vadd.f32 %v4507_v18, %v5926_v39  ;;  %v1786_v55 = vpop.f32.mrb[41].mxu1  ;;  %v6154_v60 = vpack.c.bf16 %v5238_v32, %v5234_v13 }
 0x1bb   :  { %v1948_v53 = vadd.f32 %v5926_v39, %v1786_v55  ;;  %v4508_v54 = vpop.f32.mrb[42].mxu1 }
 0x1bc   :  { %5247 = vtanh.f32 %v1950_v24  ;;  %v1951_v40 = vadd.f32 %v4508_v54, %v5926_v39  ;;  %v1789_v28 = vpop.f32.mrb[43].mxu1  ;;  %4545 = vmatprep.mubr.bf16.mxu0 %v6154_v60 }
 0x1bd   :  { %5249 = vtanh.f32 %v1948_v53  ;;  %v1949_v29 = vadd.f32 %v5926_v39, %v1789_v28  ;;  %v5094_v28 = vld [vmem:[%s6484_s8 + $0x8] sm:$0xff]  }
 0x1be   :  { %v5240_v37 = vpop.eup %5239  ;;  %5251 = vtanh.f32 %v1951_v40  ;;  %v5093_v40 = vld [vmem:[%s6484_s8] sm:$0xff]  }
 0x1bf   :  { %v5242_v33 = vpop.eup %5241  ;;  %5253 = vtanh.f32 %v1949_v29  ;;  %4649 = vmatprep.subr.bf16.mxu1 %v5093_v40  ;;  %v5086_v29 = vld [vmem:[%s6482_s6 + $0x88] sm:$0xff]  }
 0x1c0   :  { %v5244_v3 = vpop.eup %5243  ;;  %4650 = vmatpush3.bf16.msra.mxu1 %v5093_v40 }
 0x1c1   :  { %v5246_v18 = vpop.eup %5245  ;;  %v6161_v13 = vpack.c.bf16 %v5244_v3, %v5240_v37  ;;  %4651 = vmatprep.subr.bf16.mxu1 %v5094_v28 }
 0x1c2   :  { %4546 = vmatmul.mubr.bf16.gmra.mrb[52].mxu0 %v6151_v34  ;;  %v6163_v32 = vpack.c.bf16 %v5246_v18, %v5242_v33 }
 0x1c4   :  { %4549 = vmatprep.mubr.bf16.mxu0 %v6163_v32  ;;  %4652 = vmatpush3.bf16.msra.mxu1 %v5094_v28 }
 0x1c5   :  { %4653 = vmatprep.subr.bf16.mxu1 %v5095_v57 }
 0x1c6   :  { %v6166_v24 = vpop.eup %5247 }
 0x1c7   :  { %v6168_v55 = vpop.eup %5249 }
 0x1c8   :  { %v6170_v53 = vpop.eup %5251  ;;  %4654 = vmatpush3.bf16.msra.mxu1 %v5095_v57  ;;  %v5100_v57 = vld [vmem:[%s6484_s8 + $0x38] sm:$0xff]  }
 0x1c9   :  { %v6172_v39 = vpop.eup %5253  ;;  %v1999_v54 = vpack.c.bf16 %v6170_v53, %v6166_v24  ;;  %4655 = vmatprep.subr.bf16.mxu1 %v5096_v49 }
 0x1ca   :  { %4550 = vmatmul.mubr.bf16.gmra.mrb[56].mxu0 %v6161_v13  ;;  %v1998_v37 = vpack.c.bf16 %v6172_v39, %v6168_v55 }
 0x1cb   :  { %4569 = vmatprep.mubr.bf16.mxu0 %v1904_v0  ;;  %v5088_v0 = vld [vmem:[%s6482_s6 + $0x98] sm:$0xff]  }
 0x1cc   :  { %4656 = vmatpush3.bf16.msra.mxu1 %v5096_v49 }
 0x1cd   :  { %4661 = vmatprep.subr.bf16.mxu1 %v5097_v50 }
 0x1d2   :  { %4570 = vmatmul.mubr.bf16.vlgmr.msra.gmra.mrb[60].mxu0 %v1905_v61  ;;  %v6490_v61 = vpack.c.bf16 %v5972_v30, %v5968_v20  ;;  %v6495_v20 = vpack.c.bf16 %v6034_v23, %v6042_v45  ;;  %v6497_v30 = vpack.c.bf16 %v6062_v16, %v6054_v63 }
 0x1d3   :  { %4573 = vmatprep.mubr.bf16.mxu0 %v1906_v14  ;;  %4602 = vmatpush3.bf16.msra.mxu0 %v5085_v21  ;;  %v6494_v14 = vpack.c.bf16 %v6008_v22, %v6001_v5  ;;  %v5098_v21 = vld [vmem:[%s6484_s8 + $0x28] sm:$0xff]  }
 0x1d4   :  { %4603 = vmatprep.subr.bf16.mxu0 %v5086_v29 }
 0x1d7   :  { %4604 = vmatpush3.bf16.msra.mxu0 %v5086_v29 }
 0x1d8   :  { %4605 = vmatprep.subr.bf16.mxu0 %v5087_v59 }
 0x1da   :  { %4574 = vmatmul.mubr.bf16.gmra.mrb[32].mxu0 %v1907_v11  ;;  %v6493_v11 = vpack.c.bf16 %v6010_v15, %v6004_v12 }
 0x1db   :  { %4577 = vmatprep.mubr.bf16.mxu0 %v1908_v42  ;;  %4606 = vmatpush3.bf16.msra.mxu0 %v5087_v59  ;;  %v6499_v42 = vpack.c.bf16 %v6091_v17, %v6078_v26 }
 0x1dc   :  { %4607 = vmatprep.subr.bf16.mxu0 %v5088_v0 }
 0x1df   :  { %4608 = vmatpush3.bf16.msra.mxu0 %v5088_v0 }
 0x1e0   :  { %4609 = vmatprep.subr.bf16.mxu0 %v5089_v56 }
 0x1e2   :  { %4578 = vmatmul.mubr.bf16.gmra.mrb[36].mxu0 %v6490_v61 }
 0x1e3   :  { %4581 = vmatprep.mubr.bf16.mxu0 %v6491_v6  ;;  %4610 = vmatpush3.bf16.msra.mxu0 %v5089_v56  ;;  %v5101_v6 = vld [vmem:[%s6484_s8 + $0x40] sm:$0xff]  }
 0x1e4   :  { %4611 = vmatprep.subr.bf16.mxu0 %v5090_v58 }
 0x1e7   :  { %4612 = vmatpush3.bf16.msra.mxu0 %v5090_v58 }
 0x1e8   :  { %4613 = vmatprep.subr.bf16.mxu0 %v5091_v7 }
 0x1ea   :  { %4582 = vmatmul.mubr.bf16.gmra.mrb[40].mxu0 %v6492_v9 }
 0x1eb   :  { %4585 = vmatprep.mubr.bf16.mxu0 %v6493_v11  ;;  %4614 = vmatpush3.bf16.msra.mxu0 %v5091_v7 }
 0x1ec   :  { %4615 = vmatprep.subr.bf16.mxu0 %v5092_v8 }
 0x1ef   :  { %4616 = vmatpush3.bf16.msra.mxu0 %v5092_v8 }
 0x1f2   :  { %4586 = vmatmul.mubr.bf16.gmra.mrb[44].mxu0 %v6494_v14 }
 0x1f3   :  { %4589 = vmatprep.mubr.bf16.mxu0 %v6495_v20 }
 0x1fa   :  { %4590 = vmatmul.mubr.bf16.gmra.mrb[48].mxu0 %v6496_v25 }
 0x1fb   :  { %4593 = vmatprep.mubr.bf16.mxu0 %v6497_v30 }
 0x202   :  { %4594 = vmatmul.mubr.bf16.gmra.mrb[52].mxu0 %v6498_v35 }
 0x203   :  { %4597 = vmatprep.mubr.bf16.mxu0 %v6499_v42  ;;  %v5102_v42 = vld [vmem:[%s6484_s8 + $0x48] sm:$0xff]  }
 0x20a   :  { %4598 = vmatmul.mubr.bf16.gmra.mrb[56].mxu0 %v6500_v48 }
 0x20b   :  { %4617 = vmatprep.mubr.bf16.mxu0 %v6070_v46 }
 0x212   :  { %4618 = vmatmul.mubr.bf16.vlgmr.msra.gmra.mrb[60].mxu0 %v6065_v19 }
 0x213   :  { %4621 = vmatprep.mubr.bf16.mxu0 %v6099_v43 }
 0x21a   :  { %4622 = vmatmul.mubr.bf16.gmra.mrb[32].mxu0 %v6094_v41 }
 0x21b   :  { %4625 = vmatprep.mubr.bf16.mxu0 %v6109_v47 }
 0x222   :  { %4626 = vmatmul.mubr.bf16.gmra.mrb[36].mxu0 %v6106_v10 }
 0x223   :  { %4629 = vmatprep.mubr.bf16.mxu0 %v6125_v31 }
 0x22a   :  { %4630 = vmatmul.mubr.bf16.gmra.mrb[40].mxu0 %v6122_v38 }
 0x22b   :  { %4633 = vmatprep.mubr.bf16.mxu0 %v6141_v44 }
 0x232   :  { %4634 = vmatmul.mubr.bf16.gmra.mrb[44].mxu0 %v6138_v36 }
 0x233   :  { %4637 = vmatprep.mubr.bf16.mxu0 %v6154_v60 }
 0x23a   :  { %4638 = vmatmul.mubr.bf16.gmra.mrb[48].mxu0 %v6151_v34 }
 0x23b   :  { %4641 = vmatprep.mubr.bf16.mxu0 %v6163_v32  ;;  %v5099_v32 = vld [vmem:[%s6484_s8 + $0x30] sm:$0xff]  }
 0x242   :  { %4642 = vmatmul.mubr.bf16.gmra.mrb[52].mxu0 %v6161_v13 }
 0x243   :  { %4645 = vmatprep.mubr.bf16.mxu0 %v1998_v37 }
 0x24a   :  { %4646 = vmatmul.mubr.bf16.gmra.mrb[56].mxu0 %v1999_v54 }
 0x2e5   :  { %v4619_v60 = vpop.f32.mrb[60].mxu0 }
 0x2e6   :  { %v2734_v5 = vadd.f32 %v4619_v60, %v6283_v51  ;;  %v2566_v12 = vpop.f32.mrb[61].mxu0 }
 0x2e7   :  { %v2732_v22 = vadd.f32 %v6283_v51, %v2566_v12  ;;  %v4620_v15 = vpop.f32.mrb[62].mxu0  ;;  %v5103_v12 = vld [vmem:[%s6484_s8 + $0x50] sm:$0xff]  }
 0x2e8   :  { %5255 = vtanh.f32 %v2734_v5  ;;  %v2735_v2 = vadd.f32 %v4620_v15, %v6283_v51  ;;  %v2569_v4 = vpop.f32.mrb[63].mxu0 }
 0x2e9   :  { %5257 = vtanh.f32 %v2732_v22  ;;  %v2733_v23 = vadd.f32 %v6283_v51, %v2569_v4 }
 0x2ea   :  { %5259 = vtanh.f32 %v2735_v2 }
 0x2eb   :  { %5261 = vtanh.f32 %v2733_v23 }
 0x2ed   :  { %v4623_v45 = vpop.f32.mrb[32].mxu0 }
 0x2ee   :  { %v2738_v27 = vadd.f32 %v4623_v45, %v6283_v51  ;;  %v2582_v63 = vpop.f32.mrb[33].mxu0 }
 0x2ef   :  { %v2736_v1 = vadd.f32 %v6283_v51, %v2582_v63  ;;  %v4624_v16 = vpop.f32.mrb[34].mxu0 }
 0x2f0   :  { %5263 = vtanh.f32 %v2738_v27  ;;  %v2739_v19 = vadd.f32 %v4624_v16, %v6283_v51  ;;  %v2585_v43 = vpop.f32.mrb[35].mxu0  ;;  %v5104_v16 = vld [vmem:[%s6484_s8 + $0x58] sm:$0xff]  }
 0x2f1   :  { %5265 = vtanh.f32 %v2736_v1  ;;  %v2737_v46 = vadd.f32 %v6283_v51, %v2585_v43 }
 0x2f2   :  { %v5256_v52 = vpop.eup %5255  ;;  %5267 = vtanh.f32 %v2739_v19 }
 0x2f3   :  { %v5258_v26 = vpop.eup %5257  ;;  %5269 = vtanh.f32 %v2737_v46 }
 0x2f4   :  { %v5260_v62 = vpop.eup %5259 }
 0x2f5   :  { %v5262_v17 = vpop.eup %5261  ;;  %v2797_v41 = vpack.c.bf16 %v5260_v62, %v5256_v52  ;;  %v4627_v10 = vpop.f32.mrb[36].mxu0  ;;  %v5105_v62 = vld [vmem:[%s6484_s8 + $0x60] sm:$0xff]  }
 0x2f6   :  { %v2742_v47 = vadd.f32 %v4627_v10, %v6283_v51  ;;  %v2598_v38 = vpop.f32.mrb[37].mxu0  ;;  %v2796_v31 = vpack.c.bf16 %v5262_v17, %v5258_v26 }
 0x2f7   :  { %v2740_v36 = vadd.f32 %v6283_v51, %v2598_v38  ;;  %v4628_v44 = vpop.f32.mrb[38].mxu0 }
 0x2f8   :  { %5271 = vtanh.f32 %v2742_v47  ;;  %v2743_v34 = vadd.f32 %v4628_v44, %v6283_v51  ;;  %v2601_v33 = vpop.f32.mrb[39].mxu0  ;;  %4657 = vmatprep.mubr.msk.bf16.mxu1 %vm2845_vm2, %v2796_v31 }
 0x2f9   :  { %5273 = vtanh.f32 %v2740_v36  ;;  %v2741_v3 = vadd.f32 %v6283_v51, %v2601_v33  ;;  %4658 = vmatmul.mubr.msk.bf16.vlgmr.msra.gmra.mrb[44].mxu1 %vm2845_vm2, %v2797_v41 }
 0x2fa   :  { %v5264_v18 = vpop.eup %5263  ;;  %5275 = vtanh.f32 %v2743_v34  ;;  %4662 = vmatpush3.bf16.msra.mxu1 %v5097_v50  ;;  %v5106_v34 = vld [vmem:[%s6484_s8 + $0x68] sm:$0xff]  }
 0x2fb   :  { %v5266_v13 = vpop.eup %5265  ;;  %5277 = vtanh.f32 %v2741_v3  ;;  %4663 = vmatprep.subr.bf16.mxu1 %v5098_v21 }
 0x2fc   :  { %v5268_v24 = vpop.eup %5267 }
 0x2fd   :  { %v5270_v55 = vpop.eup %5269  ;;  %v4631_v53 = vpop.f32.mrb[40].mxu0  ;;  %v2799_v39 = vpack.c.bf16 %v5268_v24, %v5264_v18  ;;  %v5107_v24 = vld [vmem:[%s6484_s8 + $0x70] sm:$0xff]  }
 0x2fe   :  { %v2746_v54 = vadd.f32 %v4631_v53, %v6283_v51  ;;  %4664 = vmatpush3.bf16.msra.mxu1 %v5098_v21  ;;  %v2614_v37 = vpop.f32.mrb[41].mxu0  ;;  %v2798_v40 = vpack.c.bf16 %v5270_v55, %v5266_v13 }
 0x2ff   :  { %v2744_v28 = vadd.f32 %v6283_v51, %v2614_v37  ;;  %v4632_v29 = vpop.f32.mrb[42].mxu0  ;;  %4665 = vmatprep.subr.bf16.mxu1 %v5099_v32 }
 0x300   :  { %5279 = vtanh.f32 %v2746_v54  ;;  %v2747_v59 = vadd.f32 %v4632_v29, %v6283_v51  ;;  %v2617_v0 = vpop.f32.mrb[43].mxu0  ;;  %4669 = vmatprep.mubr.msk.bf16.mxu1 %vm2845_vm2, %v2798_v40 }
 0x301   :  { %5281 = vtanh.f32 %v2744_v28  ;;  %v2745_v56 = vadd.f32 %v6283_v51, %v2617_v0 }
 0x302   :  { %v6313_v58 = vpop.eup %5271  ;;  %5283 = vtanh.f32 %v2747_v59  ;;  %4666 = vmatpush3.bf16.msra.mxu1 %v5099_v32  ;;  %v5108_v59 = vld [vmem:[%s6484_s8 + $0x78] sm:$0xff]  }
 0x303   :  { %v5274_v61 = vpop.eup %5273  ;;  %5285 = vtanh.f32 %v2745_v56  ;;  %4667 = vmatprep.subr.bf16.mxu1 %v5100_v57 }
 0x304   :  { %v6318_v7 = vpop.eup %5275 }
 0x305   :  { %v5278_v8 = vpop.eup %5277  ;;  %v4635_v9 = vpop.f32.mrb[44].mxu0  ;;  %v2801_v11 = vpack.c.bf16 %v6318_v7, %v6313_v58  ;;  %v5109_v7 = vld [vmem:[%s6484_s8 + $0x80] sm:$0xff]  }
 0x306   :  { %v2750_v14 = vadd.f32 %v4635_v9, %v6283_v51  ;;  %4668 = vmatpush3.bf16.msra.mxu1 %v5100_v57  ;;  %v2630_v20 = vpop.f32.mrb[45].mxu0  ;;  %v2800_v25 = vpack.c.bf16 %v5278_v8, %v5274_v61 }
 0x307   :  { %v2748_v30 = vadd.f32 %v6283_v51, %v2630_v20  ;;  %v4636_v35 = vpop.f32.mrb[46].mxu0  ;;  %4673 = vmatprep.subr.bf16.mxu1 %v5101_v6 }
 0x308   :  { %5287 = vtanh.f32 %v2750_v14  ;;  %v2751_v48 = vadd.f32 %v4636_v35, %v6283_v51  ;;  %v2633_v49 = vpop.f32.mrb[47].mxu0 }
 0x309   :  { %5289 = vtanh.f32 %v2748_v30  ;;  %v2749_v50 = vadd.f32 %v6283_v51, %v2633_v49  ;;  %4670 = vmatmul.mubr.msk.bf16.vlgmr.msra.gmra.mrb[44].mxu1 %vm2845_vm2, %v2799_v39  ;;  %v5111_v30 = vld [vmem:[%s6484_s8 + $0x90] sm:$0xff]  }
 0x30a   :  { %v6330_v60 = vpop.eup %5279  ;;  %5291 = vtanh.f32 %v2751_v48  ;;  %4674 = vmatpush3.bf16.msra.mxu1 %v5101_v6  ;;  %4681 = vmatprep.mubr.msk.bf16.mxu1 %vm2845_vm2, %v2800_v25 }
 0x30b   :  { %v5282_v5 = vpop.eup %5281  ;;  %5293 = vtanh.f32 %v2749_v50  ;;  %4675 = vmatprep.subr.bf16.mxu1 %v5102_v42  ;;  %v5112_v50 = vld [vmem:[%s6484_s8 + $0x98] sm:$0xff]  }
 0x30c   :  { %v6336_v22 = vpop.eup %5283 }
 0x30d   :  { %v5286_v15 = vpop.eup %5285  ;;  %v4639_v2 = vpop.f32.mrb[48].mxu0  ;;  %v2803_v4 = vpack.c.bf16 %v6336_v22, %v6330_v60  ;;  %v5113_v60 = vld [vmem:[%s6484_s8 + $0xa0] sm:$0xff]   ;;  %v5116_v22 = vld [vmem:[%s6484_s8 + $0xb8] sm:$0xff]  }
 0x30e   :  { %v2754_v23 = vadd.f32 %v4639_v2, %v6283_v51  ;;  %4676 = vmatpush3.bf16.msra.mxu1 %v5102_v42  ;;  %v2646_v45 = vpop.f32.mrb[49].mxu0  ;;  %v2802_v27 = vpack.c.bf16 %v5286_v15, %v5282_v5  ;;  %v5114_v5 = vld [vmem:[%s6484_s8 + $0xa8] sm:$0xff]   ;;  %v5117_v15 = vld [vmem:[%s6484_s8 + $0xc0] sm:$0xff]  }
 0x30f   :  { %v2752_v63 = vadd.f32 %v6283_v51, %v2646_v45  ;;  %v4640_v1 = vpop.f32.mrb[50].mxu0  ;;  %4677 = vmatprep.subr.bf16.mxu1 %v5103_v12  ;;  %v5118_v2 = vld [vmem:[%s6484_s8 + $0xc8] sm:$0xff]   ;;  %v5121_v45 = vld [vmem:[%s6484_s8 + $0xe0] sm:$0xff]  }
 0x310   :  { %5295 = vtanh.f32 %v2754_v23  ;;  %v2755_v19 = vadd.f32 %v4640_v1, %v6283_v51  ;;  %v2649_v43 = vpop.f32.mrb[51].mxu0  ;;  %v5120_v23 = vld [vmem:[%s6484_s8 + $0xd8] sm:$0xff]  }
 0x311   :  { %5297 = vtanh.f32 %v2752_v63  ;;  %v2753_v46 = vadd.f32 %v6283_v51, %v2649_v43  ;;  %v5123_v63 = vld [vmem:[%s6484_s8 + $0xf0] sm:$0xff]   ;;  %v5124_v1 = vld [vmem:[%s6484_s8 + $0xf8] sm:$0xff]   ;;  %v3905_v43 = vld [vmem:[%s6487_s9] ss:$0 sm:$0xff] }
 0x312   :  { %v6347_v52 = vpop.eup %5287  ;;  %5299 = vtanh.f32 %v2755_v19  ;;  %4678 = vmatpush3.bf16.msra.mxu1 %v5103_v12  ;;  %v5115_v12 = vld [vmem:[%s6484_s8 + $0xb0] sm:$0xff]   ;;  %v5126_v19 = vld [vmem:[%s6486_s10 + $0x8] sm:$0xff]  }
 0x313   :  { %v6349_v26 = vpop.eup %5289  ;;  %5301 = vtanh.f32 %v2753_v46  ;;  %4679 = vmatprep.subr.bf16.mxu1 %v5104_v16 }
 0x314   :  { %v6354_v17 = vpop.eup %5291 }
 0x315   :  { %v5294_v41 = vpop.eup %5293  ;;  %v4643_v10 = vpop.f32.mrb[52].mxu0  ;;  %v2805_v47 = vpack.c.bf16 %v6354_v17, %v6347_v52 }
 0x316   :  { %v2758_v38 = vadd.f32 %v4643_v10, %v6283_v51  ;;  %4680 = vmatpush3.bf16.msra.mxu1 %v5104_v16  ;;  %v2662_v31 = vpop.f32.mrb[53].mxu0  ;;  %v2804_v36 = vpack.c.bf16 %v5294_v41, %v6349_v26  ;;  %v5125_v16 = vld [vmem:[%s6486_s10] sm:$0xff]  }
 0x317   :  { %v2756_v44 = vadd.f32 %v6283_v51, %v2662_v31  ;;  %v4644_v21 = vpop.f32.mrb[54].mxu0  ;;  %4685 = vmatprep.subr.bf16.mxu1 %v5105_v62 }
 0x318   :  { %5303 = vtanh.f32 %v2758_v38  ;;  %v2759_v33 = vadd.f32 %v4644_v21, %v6283_v51  ;;  %v2665_v3 = vpop.f32.mrb[55].mxu0 }
 0x319   :  { %5305 = vtanh.f32 %v2756_v44  ;;  %v2757_v18 = vadd.f32 %v6283_v51, %v2665_v3  ;;  %4682 = vmatmul.mubr.msk.bf16.vlgmr.msra.gmra.mrb[44].mxu1 %vm2845_vm2, %v2801_v11 }
 0x31a   :  { %v6370_v13 = vpop.eup %5295  ;;  %5307 = vtanh.f32 %v2759_v33  ;;  %4686 = vmatpush3.bf16.msra.mxu1 %v5105_v62  ;;  %4693 = vmatprep.mubr.msk.bf16.mxu1 %vm2845_vm2, %v2802_v27  ;;  %v5122_v27 = vld [vmem:[%s6484_s8 + $0xe8] sm:$0xff]   ;;  %v4004_v33 = vld [vmem:[%s6488_s11] ss:$0 sm:$0xff] }
 0x31b   :  { %v5298_v32 = vpop.eup %5297  ;;  %5309 = vtanh.f32 %v2757_v18  ;;  %4687 = vmatprep.subr.bf16.mxu1 %v5106_v34 }
 0x31c   :  { %v6376_v55 = vpop.eup %5299 }
 0x31d   :  { %v5302_v53 = vpop.eup %5301  ;;  %v4647_v39 = vpop.f32.mrb[56].mxu0  ;;  %v2807_v54 = vpack.c.bf16 %v6376_v55, %v6370_v13 }
 0x31e   :  { %v2762_v37 = vadd.f32 %v4647_v39, %v6283_v51  ;;  %4688 = vmatpush3.bf16.msra.mxu1 %v5106_v34  ;;  %v2678_v40 = vpop.f32.mrb[57].mxu0  ;;  %v2806_v28 = vpack.c.bf16 %v5302_v53, %v5298_v32 }
 0x31f   :  { %v2760_v29 = vadd.f32 %v6283_v51, %v2678_v40  ;;  %v4648_v57 = vpop.f32.mrb[58].mxu0  ;;  %4689 = vmatprep.subr.bf16.mxu1 %v5107_v24 }
 0x320   :  { %5311 = vtanh.f32 %v2762_v37  ;;  %v2763_v0 = vadd.f32 %v4648_v57, %v6283_v51  ;;  %v2681_v56 = vpop.f32.mrb[59].mxu0 }
 0x321   :  { %5313 = vtanh.f32 %v2760_v29  ;;  %v2761_v58 = vadd.f32 %v6283_v51, %v2681_v56  ;;  %v5110_v51 = vld [vmem:[%s6484_s8 + $0x88] sm:$0xff]  }
 0x322   :  { %v6387_v61 = vpop.eup %5303  ;;  %5315 = vtanh.f32 %v2763_v0  ;;  %4690 = vmatpush3.bf16.msra.mxu1 %v5107_v24 }
 0x323   :  { %v5306_v6 = vpop.eup %5305  ;;  %5317 = vtanh.f32 %v2761_v58  ;;  %4691 = vmatprep.subr.bf16.mxu1 %v5108_v59 }
 0x324   :  { %v5308_v8 = vpop.eup %5307 }
 0x325   :  { %v5310_v9 = vpop.eup %5309  ;;  %v2809_v11 = vpack.c.bf16 %v5308_v8, %v6387_v61 }
 0x326   :  { %4692 = vmatpush3.bf16.msra.mxu1 %v5108_v59  ;;  %v2808_v14 = vpack.c.bf16 %v5310_v9, %v5306_v6 }
 0x327   :  { %4697 = vmatprep.subr.bf16.mxu1 %v5109_v7 }
 0x329   :  { %4694 = vmatmul.mubr.msk.bf16.vlgmr.msra.gmra.mrb[44].mxu1 %vm2845_vm2, %v2803_v4  ;;  %v5119_v4 = vld [vmem:[%s6484_s8 + $0xd0] sm:$0xff]  }
 0x32a   :  { %v5312_v20 = vpop.eup %5311  ;;  %4698 = vmatpush3.bf16.msra.mxu1 %v5109_v7  ;;  %4705 = vmatprep.mubr.msk.bf16.mxu1 %vm2845_vm2, %v2804_v36 }
 0x32b   :  { %v5314_v25 = vpop.eup %5313  ;;  %4699 = vmatprep.subr.bf16.mxu1 %v5110_v51 }
 0x32c   :  { %v5316_v35 = vpop.eup %5315 }
 0x32d   :  { %v5318_v42 = vpop.eup %5317  ;;  %v2811_v48 = vpack.c.bf16 %v5316_v35, %v5312_v20 }
 0x32e   :  { %4700 = vmatpush3.bf16.msra.mxu1 %v5110_v51  ;;  %v2810_v49 = vpack.c.bf16 %v5318_v42, %v5314_v25 }
 0x32f   :  { %4701 = vmatprep.subr.bf16.mxu1 %v5111_v30 }
 0x332   :  { %4702 = vmatpush3.bf16.msra.mxu1 %v5111_v30 }
 0x333   :  { %4703 = vmatprep.subr.bf16.mxu1 %v5112_v50 }
 0x336   :  { %4704 = vmatpush3.bf16.msra.mxu1 %v5112_v50 }
 0x337   :  { %4709 = vmatprep.subr.bf16.mxu1 %v5113_v60 }
 0x339   :  { %4706 = vmatmul.mubr.msk.bf16.vlgmr.msra.gmra.mrb[44].mxu1 %vm2845_vm2, %v2805_v47 }
 0x33a   :  { %4710 = vmatpush3.bf16.msra.mxu1 %v5113_v60  ;;  %4717 = vmatprep.mubr.msk.bf16.mxu1 %vm2845_vm2, %v2806_v28 }
 0x33b   :  { %4711 = vmatprep.subr.bf16.mxu1 %v5114_v5 }
 0x33e   :  { %4712 = vmatpush3.bf16.msra.mxu1 %v5114_v5 }
 0x33f   :  { %4713 = vmatprep.subr.bf16.mxu1 %v5115_v12 }
 0x342   :  { %4714 = vmatpush3.bf16.msra.mxu1 %v5115_v12 }
 0x343   :  { %4715 = vmatprep.subr.bf16.mxu1 %v5116_v22 }
 0x346   :  { %4716 = vmatpush3.bf16.msra.mxu1 %v5116_v22 }
 0x347   :  { %4721 = vmatprep.subr.bf16.mxu1 %v5117_v15 }
 0x349   :  { %4718 = vmatmul.mubr.msk.bf16.vlgmr.msra.gmra.mrb[44].mxu1 %vm2845_vm2, %v2807_v54 }
 0x34a   :  { %4722 = vmatpush3.bf16.msra.mxu1 %v5117_v15  ;;  %4729 = vmatprep.mubr.msk.bf16.mxu1 %vm2845_vm2, %v2808_v14 }
 0x34b   :  { %4723 = vmatprep.subr.bf16.mxu1 %v5118_v2 }
 0x34e   :  { %4724 = vmatpush3.bf16.msra.mxu1 %v5118_v2 }
 0x34f   :  { %4725 = vmatprep.subr.bf16.mxu1 %v5119_v4 }
 0x352   :  { %4726 = vmatpush3.bf16.msra.mxu1 %v5119_v4 }
 0x353   :  { %4727 = vmatprep.subr.bf16.mxu1 %v5120_v23 }
 0x356   :  { %4728 = vmatpush3.bf16.msra.mxu1 %v5120_v23 }
 0x357   :  { %4733 = vmatprep.subr.bf16.mxu1 %v5121_v45 }
 0x359   :  { %4730 = vmatmul.mubr.msk.bf16.vlgmr.msra.gmra.mrb[44].mxu1 %vm2845_vm2, %v2809_v11 }
 0x35a   :  { %4734 = vmatpush3.bf16.msra.mxu1 %v5121_v45  ;;  %4741 = vmatprep.mubr.msk.bf16.mxu1 %vm2845_vm2, %v2810_v49 }
 0x35b   :  { %4735 = vmatprep.subr.bf16.mxu1 %v5122_v27 }
 0x35e   :  { %4736 = vmatpush3.bf16.msra.mxu1 %v5122_v27 }
 0x35f   :  { %4737 = vmatprep.subr.bf16.mxu1 %v5123_v63 }
 0x362   :  { %4738 = vmatpush3.bf16.msra.mxu1 %v5123_v63 }
 0x363   :  { %4739 = vmatprep.subr.bf16.mxu1 %v5124_v1 }
 0x366   :  { %4740 = vmatpush3.bf16.msra.mxu1 %v5124_v1 }
 0x367   :  { %4745 = vmatprep.subr.bf16.mxu1 %v5125_v16 }
 0x369   :  { %4742 = vmatmul.mubr.msk.bf16.vlgmr.msra.gmra.mrb[44].mxu1 %vm2845_vm2, %v2811_v48 }
 0x36a   :  { %4746 = vmatpush3.bf16.msra.mxu1 %v5125_v16 }
 0x36b   :  { %4747 = vmatprep.subr.bf16.mxu1 %v5126_v19 }
 0x36e   :  { %4748 = vmatpush3.bf16.msra.mxu1 %v5126_v19 }
 0x43c   :  { %v4743_v46 = vpop.f32.mrb[44].mxu1 }
 0x43d   :  { %v4775_v52 = vadd.f32 %v4743_v46, %v3905_v43  ;;  %v3536_v26 = vpop.f32.mrb[45].mxu1 }
 0x43e   :  { %v4776_v62 = vadd.f32 %v3905_v43, %v3536_v26  ;;  %v4744_v17 = vpop.f32.mrb[46].mxu1 }
 0x43f   :  { %5319 = vtanh.f32 %v4775_v52  ;;  %v4777_v41 = vadd.f32 %v4744_v17, %v3905_v43  ;;  %v3539_v10 = vpop.f32.mrb[47].mxu1 }
 0x440   :  { %5321 = vtanh.f32 %v4776_v62  ;;  %v4778_v47 = vadd.f32 %v3905_v43, %v3539_v10 }
 0x441   :  { %5323 = vtanh.f32 %v4777_v41 }
 0x442   :  { %5325 = vtanh.f32 %v4778_v47 }
 0x449   :  { %v5320_v38 = vpop.eup %5319 }
 0x44a   :  { %v5322_v31 = vpop.eup %5321 }
 0x44b   :  { %v5324_v36 = vpop.eup %5323 }
 0x44c   :  { %v5326_v44 = vpop.eup %5325  ;;  %v3560_v21 = vpack.c.bf16 %v5324_v36, %v5320_v38 }
 0x44d   :  { %v3559_v34 = vpack.c.bf16 %v5326_v44, %v5322_v31 }
 0x44f   :  { %4749 = vmatprep.mubr.msk.bf16.mxu1 %vm3584_vm3, %v3559_v34 }
 0x450   :  { %4750 = vmatmul.mubr.msk.bf16.vlgmr.msra.gmra.mrb[48].mxu1 %vm3584_vm3, %v3560_v21 }
 0x523   :  { %v4751_v3 = vpop.f32.mrb[48].mxu1 }
 0x524   :  { %v3634_v18 = vadd.f32 %v4751_v3, %v4004_v33  ;;  %v3625_v13 = vpop.f32.mrb[49].mxu1 }
 0x525   :  { %v3626_v32 = vadd.f32 %v4004_v33, %v3625_v13  ;;  %v4752_v24 = vpop.f32.mrb[50].mxu1 }
 0x526   :  { %3642 = vst [vmem:[%s6489_s12 + $0x10] sm:$0xff] %v3634_v18  ;;  %v3637_v55 = vadd.f32 %v4752_v24, %v4004_v33  ;;  %v3628_v53 = vpop.f32.mrb[51].mxu1 }
 0x527   :  { %3640 = vst [vmem:[%s6489_s12] sm:$0xff] %v3626_v32  ;;  %v3629_v39 = vadd.f32 %v4004_v33, %v3628_v53 }
 0x528   :  { %3643 = vst [vmem:[%s6489_s12 + $0x18] sm:$0xff] %v3637_v55 }
 0x529   :  { %3641 = vst [vmem:[%s6489_s12 + $0x8] sm:$0xff] %v3629_v39 }

</bundles_post_ra>
